<compile_context>
chip_gen: v7x
topology: tpu7x:2x2x1
jax: 0.10.0
libtpu: 0.0.40
codegen_flags: <defaults>
</compile_context>

<pallas_src>
import numpy as np
import jax
import jax.numpy as jnp
from jax.experimental import pallas as pl
from jax.experimental.pallas import tpu as pltpu

# ----------------------------- configuration (small, consistent with module) ----------
B = 2                      # logical batch used in the test
DFNN_IN = 3                # dfnn_input_dim (time + params + controls)
K_IN = 8                   # first-layer K padded 3 -> 8 (clean MXU path)
N_LATENT = 4               # n_latent
N_POD = 64                 # perfect square -> spatial 8x8
NUM_STATE_VARS = 2
STATE_KEYS = ["u", "v"]
NX = 32                    # full-order dimension (rows of each V_N)
ENC_CONV_CHANNELS = [16, 32, 64]
DEC_FC_LAYERS = [128]
DFNN_HIDDEN = [256, 512, 256]
# Encoder spatial chain: 8 -> 4 -> 2 -> 1  => start_spatial_dim = 1, fc_input_dim = 64
START_SPATIAL = 1
DEC_FC_IN = ENC_CONV_CHANNELS[-1] * START_SPATIAL * START_SPATIAL  # 64
UN_W = NUM_STATE_VARS * N_POD        # 128: NCHW-flat u_N width
UH_PAD = 128                         # POD output lane-padded to 128 (real width = 2*NX = 64)
OUT_W = UN_W + UH_PAD                # 256: fused [u_N | u_h_pad] output width
BIAS_ROWS, BIAS_W = 8, 512           # packed-bias buffer
MAX_TILE_B = 128                     # batch-tile rows per grid step

# TODO(synk): F.interpolate(bilinear) fallback is not implemented; with N_pod=64 the
# decoder conv chain (1->2->4->8) already yields spatial_dim_sqrt x spatial_dim_sqrt,
# so that branch is never taken (matches the PyTorch control flow for this config).


def _round_up(n, m):
    return ((n + m - 1) // m) * m


# ----------------------------- in-kernel math helpers ---------------------------------
def _gelu_tanh(x):
    # tanh-form GELU; tanh goes to the EUP (free VLIW slot next to MXU/VPU).
    # TODO(synk): differs from PyTorch's exact-erf GELU by ~1e-3 relative; swap back to
    # an erf-series GELU if bit-level matching against the PyTorch reference is needed.
    c = 0.7978845608028654  # sqrt(2/pi)
    return 0.5 * x * (1.0 + jnp.tanh(c * (x + 0.044715 * (x * x * x))))


# ----------------------------- fused Pallas kernel -------------------------------------
def _fused_forward_kernel(x_ref,
                          w0, w1, w2, w3f, wf1, m0, m1, mtail,   # bf16 weights (VMEM-resident)
                          bias_ref,                              # packed f32 biases (8, 512)
                          out_ref):
    def lin(h, w_ref, brow, bwidth, act):
        # bf16 x bf16 -> f32 accumulate on the MXU; bias/activation stay f32 on the VPU/EUP.
        y = jnp.dot(h.astype(jnp.bfloat16), w_ref[...],
                    preferred_element_type=jnp.float32)
        y = y + bias_ref[brow:brow + 1, :bwidth]
        if act == "relu":
            y = jnp.maximum(y, 0.0)
        elif act == "gelu":
            y = _gelu_tanh(y)
        return y

    h = x_ref[...]                              # (TILE_B, 8) f32, cols 3: are zero padding
    # 1) DFNN: GELU between hidden layers
    h = lin(h, w0, 0, 256, "gelu")              # (TILE_B, 256)
    h = lin(h, w1, 1, 512, "gelu")              # (TILE_B, 512)
    h = lin(h, w2, 2, 256, "gelu")              # (TILE_B, 256)
    # 2) Fused [DFNN last linear -> decoder_fc first linear] + ReLU  (no nonlinearity between)
    h = lin(h, w3f, 3, 128, "relu")             # (TILE_B, 128)
    # 3) decoder_fc second linear (output lane-padded 64 -> 128) + ReLU
    h = lin(h, wf1, 4, 128, "relu")             # (TILE_B, 128); cols 64: are exactly zero
    # 4) Decoder ConvTranspose2d chain as exact GEMMs on NCHW-flat tensors
    h = lin(h, m0, 5, 128, "relu")              # (TILE_B, 32*2*2)
    h = lin(h, m1, 6, 256, "relu")              # (TILE_B, 16*4*4)
    # 5) Fused tail: [last ConvT GEMM | ConvT GEMM @ V^T] -> [u_N (128) | u_h_pad (128)]
    y = lin(h, mtail, 7, 256, "none")           # (TILE_B, 256)
    out_ref[...] = y.astype(out_ref.dtype)


# ----------------------------- parameter setup (deterministic, synthetic) -------------
def _init_linear(key, fan_in, fan_out):
    kw, kb = jax.random.split(key)
    bound = 1.0 / np.sqrt(fan_in)
    W = np.asarray(jax.random.uniform(kw, (fan_in, fan_out), jnp.float32, -bound, bound))
    b = np.asarray(jax.random.uniform(kb, (1, fan_out), jnp.float32, -bound, bound))
    return W, b


def _init_convT(key, cin, cout, k=3):
    kw, kb = jax.random.split(key)
    bound = 1.0 / np.sqrt(cin * k * k)
    W = np.asarray(jax.random.uniform(kw, (cin, cout, k, k), jnp.float32, -bound, bound))
    b = np.asarray(jax.random.uniform(kb, (cout,), jnp.float32, -bound, bound))
    return W, b


def _convT_to_dense(W_np, H, Wsp, stride=2, pad=1):
    """Exact GEMM lowering of ConvTranspose2d(k=3, s=2, p=1, output_padding=1).

    Returns M of shape (Cin*H*W, Cout*2H*2W) such that for NCHW-flattened x:
        y_flat = x_flat @ M   ==   conv_transpose2d(x, W)  (NCHW-flattened).
    """
    Cin, Cout, K, _ = W_np.shape
    OH, OW = H * stride, Wsp * stride            # output_padding=1 => exactly 2x
    M = np.zeros((Cin * H * Wsp, Cout * OH * OW), np.float32)
    for ci in range(Cin):
        for iy in range(H):
            for ix in range(Wsp):
                row = ci * H * Wsp + iy * Wsp + ix
                for co in range(Cout):
                    for ky in range(K):
                        oy = iy * stride + ky - pad
                        if not (0 <= oy < OH):
                            continue
                        for kx in range(K):
                            ox = ix * stride + kx - pad
                            if not (0 <= ox < OW):
                                continue
                            M[row, co * OH * OW + oy * OW + ox] += W_np[ci, co, ky, kx]
    return M


def build_params(key):
    """Returns the flat tuple (8 bf16 weight matrices, 1 packed f32 bias array)."""
    keys = jax.random.split(key, 12)

    # --- raw f32 parameters, PyTorch-style init ---------------------------------------
    dims = [DFNN_IN] + DFNN_HIDDEN + [N_LATENT]
    (w0, b0) = _init_linear(keys[0], dims[0], dims[1])
    (w1, b1) = _init_linear(keys[1], dims[1], dims[2])
    (w2, b2) = _init_linear(keys[2], dims[2], dims[3])
    (w3, b3) = _init_linear(keys[3], dims[3], dims[4])
    wf0, bf0 = _init_linear(keys[4], N_LATENT, DEC_FC_LAYERS[0])       # 4 -> 128
    wf1, bf1 = _init_linear(keys[5], DEC_FC_LAYERS[0], DEC_FC_IN)      # 128 -> 64

    chans = list(reversed(ENC_CONV_CHANNELS)) + [NUM_STATE_VARS]       # [64, 32, 16, 2]
    convs = []
    spatial = START_SPATIAL
    for i in range(3):
        Wc, bc = _init_convT(keys[6 + i], chans[i], chans[i + 1])
        M = _convT_to_dense(Wc, spatial, spatial)
        out_sp = spatial * 2
        c_exp = np.repeat(bc, out_sp * out_sp).reshape(1, -1)          # per-channel, NCHW-flat
        convs.append((M, c_exp))
        spatial = out_sp
    (M0, c0), (M1, c1), (M2, c2) = convs    # (64,128),(1,128) / (128,256),(1,256) / (256,128),(1,128)

    # POD bases V_N (Nx, N_pod) per state variable -> block-diagonal stacked V^T,
    # lane-padded to UH_PAD output columns (padding columns are exactly zero).
    VT = np.zeros((UN_W, UH_PAD), np.float32)
    for i, _ in enumerate(STATE_KEYS):
        V = np.asarray(jax.random.normal(keys[9 + i], (NX, N_POD), jnp.float32)) / np.sqrt(N_POD)
        VT[i * N_POD:(i + 1) * N_POD, i * NX:(i + 1) * NX] = V.T

    # --- offline fusions / paddings (all exact in f32) ---------------------------------
    W0p = np.zeros((K_IN, DFNN_HIDDEN[0]), np.float32)   # K padded 3 -> 8 (zero rows)
    W0p[:DFNN_IN] = w0
    W3f = w3 @ wf0                                       # fused 256->4->128 (no act between)
    b3f = b3 @ wf0 + bf0
    Wf1p = np.zeros((DEC_FC_LAYERS[0], 128), np.float32) # output lane-padded 64 -> 128
    Wf1p[:, :DEC_FC_IN] = wf1
    bf1p = np.zeros((1, 128), np.float32)
    bf1p[:, :DEC_FC_IN] = bf1
    M0p = np.zeros((128, 128), np.float32)               # K padded 64 -> 128 (zero rows)
    M0p[:DEC_FC_IN] = M0
    Mtail = np.concatenate([M2, M2 @ VT], axis=1)        # (256, 256): [u_N | u_h_pad]
    ctail = np.concatenate([c2, c2 @ VT], axis=1)        # (1, 256)

    # --- packed bias buffer (one DMA instead of ~10) ------------------------------------
    biases = [b0, b1, b2, b3f, bf1p, c0, c1, ctail]
    bias_pack = np.zeros((BIAS_ROWS, BIAS_W), np.float32)
    for r, bb in enumerate(biases):
        bias_pack[r, :bb.shape[1]] = bb[0]

    weights = [W0p, w1, w2, W3f, Wf1p, M0p, M1, Mtail]
    flat = tuple(jnp.asarray(W, jnp.bfloat16) for W in weights) + (jnp.asarray(bias_pack),)
    return flat


# ----------------------------- forward (mirrors POD_DL_ROM.forward) -------------------
def pod_dl_rom_forward(flat_params, time_param_ctrl_input):
    Bm = time_param_ctrl_input.shape[0]
    tile_b = min(MAX_TILE_B, _round_up(max(Bm, 1), 8))
    num_tiles = -(-Bm // tile_b)
    b_pad = num_tiles * tile_b

    # Pad batch to full row tiles and K from 3 -> 8; padded rows/cols are zero.
    x_pad = jnp.zeros((b_pad, K_IN), jnp.float32).at[:Bm, :DFNN_IN].set(time_param_ctrl_input)

    weights = flat_params[:-1]
    bias_pack = flat_params[-1]

    in_specs = (
        [pl.BlockSpec((tile_b, K_IN), lambda i: (i, 0))]                 # batch-tiled input
        + [pl.BlockSpec(w.shape, lambda i: (0, 0)) for w in weights]     # weights: DMA'd once
        + [pl.BlockSpec(bias_pack.shape, lambda i: (0, 0))]              # packed biases: once
    )
    out_spec = pl.BlockSpec((tile_b, OUT_W), lambda i: (i, 0))

    # Advisory cost estimate so XLA schedules the custom call sensibly.
    kn_sum = (K_IN * 256 + 256 * 512 + 512 * 256 + 256 * 128
              + 128 * 128 + 128 * 128 + 128 * 256 + 256 * 256)
    weight_bytes = int(sum(int(np.prod(w.shape)) for w in weights)) * 2
    bytes_accessed = (weight_bytes + BIAS_ROWS * BIAS_W * 4
                      + b_pad * K_IN * 4 + b_pad * OUT_W * 4)
    flops = 2 * b_pad * kn_sum
    transcendentals = b_pad * (256 + 512 + 256)   # one tanh per GELU element

    out = pl.pallas_call(
        _fused_forward_kernel,
        out_shape=jax.ShapeDtypeStruct((b_pad, OUT_W), jnp.float32),
        grid_spec=pltpu.PrefetchScalarGridSpec(
            num_scalar_prefetch=0,
            grid=(num_tiles,),
            in_specs=in_specs,
            out_specs=out_spec,
        ),
        compiler_params=pltpu.CompilerParams(
            dimension_semantics=("parallel",),        # batch tiles shard across v7x's 2 TCs
            vmem_limit_bytes=8 * 1024 * 1024,         # right-sized (~2-3 MiB actual footprint)
        ),
        cost_estimate=pl.CostEstimate(flops=flops,
                                      transcendentals=transcendentals,
                                      bytes_accessed=bytes_accessed),
    )(x_pad, *flat_params)

    y = out[:Bm]
    # y columns: [u_N NCHW-flat (128) | u_h_u (NX) | u_h_v (NX) | zero padding (64)]
    u_N_decoded = y[:, :UN_W].reshape(Bm, NUM_STATE_VARS, N_POD)
    u_h = {k: y[:, UN_W + i * NX: UN_W + (i + 1) * NX][..., None]      # (B, Nx, 1)
           for i, k in enumerate(STATE_KEYS)}
    return u_h, u_N_decoded


# ----------------------------- main ----------------------------------------------------
if __name__ == "__main__":
    key = jax.random.PRNGKey(0)
    kp, kx = jax.random.split(key)
    params = build_params(kp)

    time_param_ctrl_input = jax.random.normal(kx, (B, DFNN_IN), jnp.float32)

    fwd = jax.jit(pod_dl_rom_forward)
    u_h_dict, u_N_stacked = fwd(params, time_param_ctrl_input)
    jax.block_until_ready((u_h_dict, u_N_stacked))

    assert u_N_stacked.shape == (B, NUM_STATE_VARS, N_POD)
    for k in STATE_KEYS:
        assert u_h_dict[k].shape == (B, NX, 1)
        assert bool(jnp.all(jnp.isfinite(u_h_dict[k])))
    assert bool(jnp.all(jnp.isfinite(u_N_stacked)))

    print("KERNEL_OK")
</pallas_src>

<mosaic_0001>
module attributes {stable_mosaic.version = 11 : i64} {
  func.func @_fused_forward_kernel(%arg0: i32, %arg1: memref<8x8xf32, #tpu.memory_space<vmem>>, %arg2: memref<8x256xbf16, #tpu.memory_space<vmem>>, %arg3: memref<256x512xbf16, #tpu.memory_space<vmem>>, %arg4: memref<512x256xbf16, #tpu.memory_space<vmem>>, %arg5: memref<256x128xbf16, #tpu.memory_space<vmem>>, %arg6: memref<128x128xbf16, #tpu.memory_space<vmem>>, %arg7: memref<128x128xbf16, #tpu.memory_space<vmem>>, %arg8: memref<128x256xbf16, #tpu.memory_space<vmem>>, %arg9: memref<256x256xbf16, #tpu.memory_space<vmem>>, %arg10: memref<8x512xf32, #tpu.memory_space<vmem>>, %arg11: memref<8x256xf32, #tpu.memory_space<vmem>>) attributes {dimension_semantics = [#tpu.dimension_semantics<parallel>], iteration_bounds = array<i64: 1>, scalar_prefetch = 0 : i64, scratch_operands = 0 : i64, tpu.core_type = #tpu.core_type<tc>, window_params = [{transform_indices = @transform_0, window_bounds = array<i64: 8, 8>}, {pipeline_mode = #tpu.pipeline_mode<synchronous>, transform_indices = @transform_1, window_bounds = array<i64: 8, 256>}, {pipeline_mode = #tpu.pipeline_mode<synchronous>, transform_indices = @transform_2, window_bounds = array<i64: 256, 512>}, {pipeline_mode = #tpu.pipeline_mode<synchronous>, transform_indices = @transform_3, window_bounds = array<i64: 512, 256>}, {pipeline_mode = #tpu.pipeline_mode<synchronous>, transform_indices = @transform_4, window_bounds = array<i64: 256, 128>}, {pipeline_mode = #tpu.pipeline_mode<synchronous>, transform_indices = @transform_5, window_bounds = array<i64: 128, 128>}, {pipeline_mode = #tpu.pipeline_mode<synchronous>, transform_indices = @transform_6, window_bounds = array<i64: 128, 128>}, {pipeline_mode = #tpu.pipeline_mode<synchronous>, transform_indices = @transform_7, window_bounds = array<i64: 128, 256>}, {pipeline_mode = #tpu.pipeline_mode<synchronous>, transform_indices = @transform_8, window_bounds = array<i64: 256, 256>}, {pipeline_mode = #tpu.pipeline_mode<synchronous>, transform_indices = @transform_9, window_bounds = array<i64: 8, 512>}, {transform_indices = @transform_10, window_bounds = array<i64: 8, 256>}]} {
    %c0 = arith.constant 0 : index
    %c0_0 = arith.constant 0 : index
    %0 = vector.load %arg1[%c0, %c0_0] : memref<8x8xf32, #tpu.memory_space<vmem>>, vector<8x8xf32>
    %1 = arith.truncf %0 : vector<8x8xf32> to vector<8x8xbf16>
    %c0_1 = arith.constant 0 : index
    %c0_2 = arith.constant 0 : index
    %2 = vector.load %arg2[%c0_1, %c0_2] : memref<8x256xbf16, #tpu.memory_space<vmem>>, vector<8x256xbf16>
    %cst = arith.constant dense<0.000000e+00> : vector<8x256xf32>
    %3 = tpu.matmul %1, %2, %cst {dimension_numbers = #tpu.dot_dimension_numbers<[1], [0], [0], [1], [0, 0, 1, 1], [], []>} : vector<8x8xbf16>, vector<8x256xbf16>, vector<8x256xf32> -> vector<8x256xf32>
    %c0_3 = arith.constant 0 : index
    %c0_4 = arith.constant 0 : index
    %4 = vector.load %arg10[%c0_3, %c0_4] : memref<8x512xf32, #tpu.memory_space<vmem>>, vector<1x256xf32>
    %5 = vector.broadcast %4 : vector<1x256xf32> to vector<8x256xf32>
    %6 = arith.addf %3, %5 : vector<8x256xf32>
    %cst_5 = arith.constant 5.000000e-01 : f32
    %7 = vector.broadcast %cst_5 : f32 to vector<8x256xf32>
    %8 = arith.mulf %7, %6 : vector<8x256xf32>
    %9 = arith.mulf %6, %6 : vector<8x256xf32>
    %10 = arith.mulf %9, %6 : vector<8x256xf32>
    %cst_6 = arith.constant 4.471500e-02 : f32
    %11 = vector.broadcast %cst_6 : f32 to vector<8x256xf32>
    %12 = arith.mulf %11, %10 : vector<8x256xf32>
    %13 = arith.addf %6, %12 : vector<8x256xf32>
    %cst_7 = arith.constant 0.797884583 : f32
    %14 = vector.broadcast %cst_7 : f32 to vector<8x256xf32>
    %15 = arith.mulf %14, %13 : vector<8x256xf32>
    %16 = math.tanh %15 : vector<8x256xf32>
    %cst_8 = arith.constant 1.000000e+00 : f32
    %17 = vector.broadcast %cst_8 : f32 to vector<8x256xf32>
    %18 = arith.addf %17, %16 : vector<8x256xf32>
    %19 = arith.mulf %8, %18 : vector<8x256xf32>
    %20 = arith.truncf %19 : vector<8x256xf32> to vector<8x256xbf16>
    %c0_9 = arith.constant 0 : index
    %c0_10 = arith.constant 0 : index
    %21 = vector.load %arg3[%c0_9, %c0_10] : memref<256x512xbf16, #tpu.memory_space<vmem>>, vector<256x512xbf16>
    %cst_11 = arith.constant dense<0.000000e+00> : vector<8x512xf32>
    %22 = tpu.matmul %20, %21, %cst_11 {dimension_numbers = #tpu.dot_dimension_numbers<[1], [0], [0], [1], [0, 0, 1, 1], [], []>} : vector<8x256xbf16>, vector<256x512xbf16>, vector<8x512xf32> -> vector<8x512xf32>
    %c1 = arith.constant 1 : index
    %c0_12 = arith.constant 0 : index
    %23 = vector.load %arg10[%c1, %c0_12] : memref<8x512xf32, #tpu.memory_space<vmem>>, vector<1x512xf32>
    %24 = vector.broadcast %23 : vector<1x512xf32> to vector<8x512xf32>
    %25 = arith.addf %22, %24 : vector<8x512xf32>
    %cst_13 = arith.constant 5.000000e-01 : f32
    %26 = vector.broadcast %cst_13 : f32 to vector<8x512xf32>
    %27 = arith.mulf %26, %25 : vector<8x512xf32>
    %28 = arith.mulf %25, %25 : vector<8x512xf32>
    %29 = arith.mulf %28, %25 : vector<8x512xf32>
    %cst_14 = arith.constant 4.471500e-02 : f32
    %30 = vector.broadcast %cst_14 : f32 to vector<8x512xf32>
    %31 = arith.mulf %30, %29 : vector<8x512xf32>
    %32 = arith.addf %25, %31 : vector<8x512xf32>
    %cst_15 = arith.constant 0.797884583 : f32
    %33 = vector.broadcast %cst_15 : f32 to vector<8x512xf32>
    %34 = arith.mulf %33, %32 : vector<8x512xf32>
    %35 = math.tanh %34 : vector<8x512xf32>
    %cst_16 = arith.constant 1.000000e+00 : f32
    %36 = vector.broadcast %cst_16 : f32 to vector<8x512xf32>
    %37 = arith.addf %36, %35 : vector<8x512xf32>
    %38 = arith.mulf %27, %37 : vector<8x512xf32>
    %39 = arith.truncf %38 : vector<8x512xf32> to vector<8x512xbf16>
    %c0_17 = arith.constant 0 : index
    %c0_18 = arith.constant 0 : index
    %40 = vector.load %arg4[%c0_17, %c0_18] : memref<512x256xbf16, #tpu.memory_space<vmem>>, vector<512x256xbf16>
    %cst_19 = arith.constant dense<0.000000e+00> : vector<8x256xf32>
    %41 = tpu.matmul %39, %40, %cst_19 {dimension_numbers = #tpu.dot_dimension_numbers<[1], [0], [0], [1], [0, 0, 1, 1], [], []>} : vector<8x512xbf16>, vector<512x256xbf16>, vector<8x256xf32> -> vector<8x256xf32>
    %c2 = arith.constant 2 : index
    %c0_20 = arith.constant 0 : index
    %42 = vector.load %arg10[%c2, %c0_20] : memref<8x512xf32, #tpu.memory_space<vmem>>, vector<1x256xf32>
    %43 = vector.broadcast %42 : vector<1x256xf32> to vector<8x256xf32>
    %44 = arith.addf %41, %43 : vector<8x256xf32>
    %cst_21 = arith.constant 5.000000e-01 : f32
    %45 = vector.broadcast %cst_21 : f32 to vector<8x256xf32>
    %46 = arith.mulf %45, %44 : vector<8x256xf32>
    %47 = arith.mulf %44, %44 : vector<8x256xf32>
    %48 = arith.mulf %47, %44 : vector<8x256xf32>
    %cst_22 = arith.constant 4.471500e-02 : f32
    %49 = vector.broadcast %cst_22 : f32 to vector<8x256xf32>
    %50 = arith.mulf %49, %48 : vector<8x256xf32>
    %51 = arith.addf %44, %50 : vector<8x256xf32>
    %cst_23 = arith.constant 0.797884583 : f32
    %52 = vector.broadcast %cst_23 : f32 to vector<8x256xf32>
    %53 = arith.mulf %52, %51 : vector<8x256xf32>
    %54 = math.tanh %53 : vector<8x256xf32>
    %cst_24 = arith.constant 1.000000e+00 : f32
    %55 = vector.broadcast %cst_24 : f32 to vector<8x256xf32>
    %56 = arith.addf %55, %54 : vector<8x256xf32>
    %57 = arith.mulf %46, %56 : vector<8x256xf32>
    %58 = arith.truncf %57 : vector<8x256xf32> to vector<8x256xbf16>
    %c0_25 = arith.constant 0 : index
    %c0_26 = arith.constant 0 : index
    %59 = vector.load %arg5[%c0_25, %c0_26] : memref<256x128xbf16, #tpu.memory_space<vmem>>, vector<256x128xbf16>
    %cst_27 = arith.constant dense<0.000000e+00> : vector<8x128xf32>
    %60 = tpu.matmul %58, %59, %cst_27 {dimension_numbers = #tpu.dot_dimension_numbers<[1], [0], [0], [1], [0, 0, 1, 1], [], []>} : vector<8x256xbf16>, vector<256x128xbf16>, vector<8x128xf32> -> vector<8x128xf32>
    %c3 = arith.constant 3 : index
    %c0_28 = arith.constant 0 : index
    %61 = vector.load %arg10[%c3, %c0_28] : memref<8x512xf32, #tpu.memory_space<vmem>>, vector<1x128xf32>
    %62 = vector.broadcast %61 : vector<1x128xf32> to vector<8x128xf32>
    %63 = arith.addf %60, %62 : vector<8x128xf32>
    %cst_29 = arith.constant 0.000000e+00 : f32
    %64 = vector.broadcast %cst_29 : f32 to vector<8x128xf32>
    %65 = arith.maximumf %63, %64 : vector<8x128xf32>
    %66 = arith.truncf %65 : vector<8x128xf32> to vector<8x128xbf16>
    %c0_30 = arith.constant 0 : index
    %c0_31 = arith.constant 0 : index
    %67 = vector.load %arg6[%c0_30, %c0_31] : memref<128x128xbf16, #tpu.memory_space<vmem>>, vector<128x128xbf16>
    %cst_32 = arith.constant dense<0.000000e+00> : vector<8x128xf32>
    %68 = tpu.matmul %66, %67, %cst_32 {dimension_numbers = #tpu.dot_dimension_numbers<[1], [0], [0], [1], [0, 0, 1, 1], [], []>} : vector<8x128xbf16>, vector<128x128xbf16>, vector<8x128xf32> -> vector<8x128xf32>
    %c4 = arith.constant 4 : index
    %c0_33 = arith.constant 0 : index
    %69 = vector.load %arg10[%c4, %c0_33] : memref<8x512xf32, #tpu.memory_space<vmem>>, vector<1x128xf32>
    %70 = vector.broadcast %69 : vector<1x128xf32> to vector<8x128xf32>
    %71 = arith.addf %68, %70 : vector<8x128xf32>
    %cst_34 = arith.constant 0.000000e+00 : f32
    %72 = vector.broadcast %cst_34 : f32 to vector<8x128xf32>
    %73 = arith.maximumf %71, %72 : vector<8x128xf32>
    %74 = arith.truncf %73 : vector<8x128xf32> to vector<8x128xbf16>
    %c0_35 = arith.constant 0 : index
    %c0_36 = arith.constant 0 : index
    %75 = vector.load %arg7[%c0_35, %c0_36] : memref<128x128xbf16, #tpu.memory_space<vmem>>, vector<128x128xbf16>
    %cst_37 = arith.constant dense<0.000000e+00> : vector<8x128xf32>
    %76 = tpu.matmul %74, %75, %cst_37 {dimension_numbers = #tpu.dot_dimension_numbers<[1], [0], [0], [1], [0, 0, 1, 1], [], []>} : vector<8x128xbf16>, vector<128x128xbf16>, vector<8x128xf32> -> vector<8x128xf32>
    %c5 = arith.constant 5 : index
    %c0_38 = arith.constant 0 : index
    %77 = vector.load %arg10[%c5, %c0_38] : memref<8x512xf32, #tpu.memory_space<vmem>>, vector<1x128xf32>
    %78 = vector.broadcast %77 : vector<1x128xf32> to vector<8x128xf32>
    %79 = arith.addf %76, %78 : vector<8x128xf32>
    %cst_39 = arith.constant 0.000000e+00 : f32
    %80 = vector.broadcast %cst_39 : f32 to vector<8x128xf32>
    %81 = arith.maximumf %79, %80 : vector<8x128xf32>
    %82 = arith.truncf %81 : vector<8x128xf32> to vector<8x128xbf16>
    %c0_40 = arith.constant 0 : index
    %c0_41 = arith.constant 0 : index
    %83 = vector.load %arg8[%c0_40, %c0_41] : memref<128x256xbf16, #tpu.memory_space<vmem>>, vector<128x256xbf16>
    %cst_42 = arith.constant dense<0.000000e+00> : vector<8x256xf32>
    %84 = tpu.matmul %82, %83, %cst_42 {dimension_numbers = #tpu.dot_dimension_numbers<[1], [0], [0], [1], [0, 0, 1, 1], [], []>} : vector<8x128xbf16>, vector<128x256xbf16>, vector<8x256xf32> -> vector<8x256xf32>
    %c6 = arith.constant 6 : index
    %c0_43 = arith.constant 0 : index
    %85 = vector.load %arg10[%c6, %c0_43] : memref<8x512xf32, #tpu.memory_space<vmem>>, vector<1x256xf32>
    %86 = vector.broadcast %85 : vector<1x256xf32> to vector<8x256xf32>
    %87 = arith.addf %84, %86 : vector<8x256xf32>
    %cst_44 = arith.constant 0.000000e+00 : f32
    %88 = vector.broadcast %cst_44 : f32 to vector<8x256xf32>
    %89 = arith.maximumf %87, %88 : vector<8x256xf32>
    %90 = arith.truncf %89 : vector<8x256xf32> to vector<8x256xbf16>
    %c0_45 = arith.constant 0 : index
    %c0_46 = arith.constant 0 : index
    %91 = vector.load %arg9[%c0_45, %c0_46] : memref<256x256xbf16, #tpu.memory_space<vmem>>, vector<256x256xbf16>
    %cst_47 = arith.constant dense<0.000000e+00> : vector<8x256xf32>
    %92 = tpu.matmul %90, %91, %cst_47 {dimension_numbers = #tpu.dot_dimension_numbers<[1], [0], [0], [1], [0, 0, 1, 1], [], []>} : vector<8x256xbf16>, vector<256x256xbf16>, vector<8x256xf32> -> vector<8x256xf32>
    %c7 = arith.constant 7 : index
    %c0_48 = arith.constant 0 : index
    %93 = vector.load %arg10[%c7, %c0_48] : memref<8x512xf32, #tpu.memory_space<vmem>>, vector<1x256xf32>
    %94 = vector.broadcast %93 : vector<1x256xf32> to vector<8x256xf32>
    %95 = arith.addf %92, %94 : vector<8x256xf32>
    %c0_49 = arith.constant 0 : index
    %c0_50 = arith.constant 0 : index
    %96 = vector.load %arg11[%c0_49, %c0_50] : memref<8x256xf32, #tpu.memory_space<vmem>>, vector<8x256xf32>
    tpu.vector_store %arg11[%c0_49, %c0_50], %95 {strides = array<i32>} : memref<8x256xf32, #tpu.memory_space<vmem>>, vector<8x256xf32>,
    return
  }
  func.func @transform_0(%arg0: i32) -> (i32, i32) {
    %c0_i32 = arith.constant 0 : i32
    %c0_i32_0 = arith.constant 0 : i32
    return %arg0, %c0_i32 : i32, i32
  }
  func.func @transform_1(%arg0: i32) -> (i32, i32) {
    %c0_i32 = arith.constant 0 : i32
    %c0_i32_0 = arith.constant 0 : i32
    %c0_i32_1 = arith.constant 0 : i32
    return %c0_i32, %c0_i32_0 : i32, i32
  }
  func.func @transform_2(%arg0: i32) -> (i32, i32) {
    %c0_i32 = arith.constant 0 : i32
    %c0_i32_0 = arith.constant 0 : i32
    %c0_i32_1 = arith.constant 0 : i32
    return %c0_i32, %c0_i32_0 : i32, i32
  }
  func.func @transform_3(%arg0: i32) -> (i32, i32) {
    %c0_i32 = arith.constant 0 : i32
    %c0_i32_0 = arith.constant 0 : i32
    %c0_i32_1 = arith.constant 0 : i32
    return %c0_i32, %c0_i32_0 : i32, i32
  }
  func.func @transform_4(%arg0: i32) -> (i32, i32) {
    %c0_i32 = arith.constant 0 : i32
    %c0_i32_0 = arith.constant 0 : i32
    %c0_i32_1 = arith.constant 0 : i32
    return %c0_i32, %c0_i32_0 : i32, i32
  }
  func.func @transform_5(%arg0: i32) -> (i32, i32) {
    %c0_i32 = arith.constant 0 : i32
    %c0_i32_0 = arith.constant 0 : i32
    %c0_i32_1 = arith.constant 0 : i32
    return %c0_i32, %c0_i32_0 : i32, i32
  }
  func.func @transform_6(%arg0: i32) -> (i32, i32) {
    %c0_i32 = arith.constant 0 : i32
    %c0_i32_0 = arith.constant 0 : i32
    %c0_i32_1 = arith.constant 0 : i32
    return %c0_i32, %c0_i32_0 : i32, i32
  }
  func.func @transform_7(%arg0: i32) -> (i32, i32) {
    %c0_i32 = arith.constant 0 : i32
    %c0_i32_0 = arith.constant 0 : i32
    %c0_i32_1 = arith.constant 0 : i32
    return %c0_i32, %c0_i32_0 : i32, i32
  }
  func.func @transform_8(%arg0: i32) -> (i32, i32) {
    %c0_i32 = arith.constant 0 : i32
    %c0_i32_0 = arith.constant 0 : i32
    %c0_i32_1 = arith.constant 0 : i32
    return %c0_i32, %c0_i32_0 : i32, i32
  }
  func.func @transform_9(%arg0: i32) -> (i32, i32) {
    %c0_i32 = arith.constant 0 : i32
    %c0_i32_0 = arith.constant 0 : i32
    %c0_i32_1 = arith.constant 0 : i32
    return %c0_i32, %c0_i32_0 : i32, i32
  }
  func.func @transform_10(%arg0: i32) -> (i32, i32) {
    %c0_i32 = arith.constant 0 : i32
    %c0_i32_0 = arith.constant 0 : i32
    return %arg0, %c0_i32 : i32, i32
  }
}

</mosaic_0001>

<bundles_post_ra>
// kernel: pod_dl_rom_forward.1
= control target key start
LH: loop header
LB: loop body
LE: loop exit
PB: predicated region body
PF: predicated region fallthrough
CT: control target
= control target key end

     0   :  { %15 = vsyncpa [#allocation3], 0  ;;  %s3105_s0 = inlined_call_operand.vmem [shape: f32[8,8], index: 0, kind: input, shape index: {}]   ;;  %s3106_s1 = inlined_call_operand.vmem [shape: bf16[8,256], index: 1, kind: input, shape index: {}]   ;;  %s3107_s2 = inlined_call_operand.hbm [shape: bf16[256,512], index: 2, kind: input, shape index: {}]   ;;  %s3108_s3 = inlined_call_operand.hbm [shape: bf16[512,256], index: 3, kind: input, shape index: {}]   ;;  %s3109_s4 = inlined_call_operand.hbm [shape: bf16[256,128], index: 4, kind: input, shape index: {}]   ;;  %s3110_s5 = inlined_call_operand.hbm [shape: bf16[128,128], index: 5, kind: input, shape index: {}]   ;;  %s3111_s6 = inlined_call_operand.hbm [shape: bf16[128,128], index: 6, kind: input, shape index: {}]   ;;  %s3112_s7 = inlined_call_operand.hbm [shape: bf16[128,256], index: 7, kind: input, shape index: {}]   ;;  %s3113_s8 = inlined_call_operand.hbm [shape: bf16[256,256], index: 8, kind: input, shape index: {}]   ;;  %s3114_s9 = inlined_call_operand.vmem [shape: f32[8,512], index: 9, kind: input, shape index: {}]   ;;  %s3115_s10 = inlined_call_operand.vmem [shape: f32[8,256], index: 10, kind: output, shape index: {}]  }
   0x1   :  { %16 = vsyncpa [#allocation5], 0 }
   0x2   :  { %17 = vsyncpa [#allocation8], 0 }
   0x3   :  { %18 = vsyncpa [#allocation11], 0  ;;  %s2840_s13 = smov [#allocation4]   ;;  %s2678_s17 = scalar_lea.hbm %s3108_s3, 8192 }
   0x4   :  { %s40_s14 = sshll.u32 %s2840_s13, 4  ;;  %p2679_p0 = scmp.ne.s32.totalorder %s3108_s3, %s2678_s17  ;;  %s41_s14 = int_to_ptr.vmem [resolvable:$true] %s40_s14 }
   0x5   :  { %p2682_p1 = scmp.lt.u32.totalorder %s2678_s17, %s3108_s3 }
   0x7   :  { %p2684_p2 = pnand %p2682_p1, %p2679_p0 }
   0x9   :  { %2687 = shalt.err (!%p2684_p2)
}
   0xa   :  { %s2688_s22 = scalar_lea.vmem %s41_s14, 8192  ;;  %p2693_p4 = scmp.lt.s32.totalorder %s41_s14, %s41_s14 }
   0xb   :  { %p2689_p3 = scmp.ne.s32.totalorder %s41_s14, %s2688_s22  ;;  %p2694_p5 = scmp.lt.s32.totalorder %s2688_s22, %s2688_s22 }
   0xd   :  { %p2695_p6 = por %p2694_p5, %p2693_p4 }
   0xf   :  { %p2696_p7 = pnand %p2695_p6, %p2689_p3 }
  0x11   :  { %2699 = shalt.err (!%p2696_p7)
}
  0x12   :  { %s2841_s23 = smov 128   ;;  %s2842_s24 = smov 8  }
  0x13   :  { %46 = dma.hbm_to_vmem [thread:$0]  %s3108_s3, 8192, %s41_s14, [#allocation5], %s2841_s23, %s2841_s23, %s2842_s24  }
  0x14   :  { %s2843_s27 = smov [#allocation7]   ;;  %s2844_s29 = smov [#allocation10]  }
  0x15   :  { %s64_s28 = sshll.u32 %s2843_s27, 4  ;;  %s88_s30 = sshll.u32 %s2844_s29, 4  ;;  %s65_s28 = int_to_ptr.vmem [resolvable:$true] %s64_s28  ;;  %s89_s30 = int_to_ptr.vmem [resolvable:$true] %s88_s30 }
  0x16   :  { %s2700_s13 = scalar_lea.hbm %s3110_s5, 1024 }
  0x17   :  { %p2701_p8 = scmp.ne.s32.totalorder %s3110_s5, %s2700_s13  ;;  %p2704_p9 = scmp.lt.u32.totalorder %s2700_s13, %s3110_s5 }
  0x19   :  { %p2706_p10 = pnand %p2704_p9, %p2701_p8 }
  0x1b   :  { %2709 = shalt.err (!%p2706_p10)
}
  0x1c   :  { %s2710_s3 = scalar_lea.vmem %s65_s28, 1024  ;;  %p2715_p12 = scmp.lt.s32.totalorder %s65_s28, %s65_s28 }
  0x1d   :  { %p2711_p11 = scmp.ne.s32.totalorder %s65_s28, %s2710_s3  ;;  %p2716_p13 = scmp.lt.s32.totalorder %s2710_s3, %s2710_s3 }
  0x1f   :  { %p2717_p0 = por %p2716_p13, %p2715_p12 }
  0x21   :  { %p2718_p1 = pnand %p2717_p0, %p2711_p11 }
  0x23   :  { %2721 = shalt.err (!%p2718_p1)
}
  0x24   :  { %s2845_s14 = smov 64   ;;  %s2846_s19 = smov 4  }
  0x25   :  { %70 = dma.hbm_to_vmem [thread:$0]  %s3110_s5, 1024, %s65_s28, [#allocation8], %s2845_s14, %s2845_s14, %s2846_s19  }
  0x26   :  { %s2722_s26 = scalar_lea.hbm %s3112_s7, 2048 }
  0x27   :  { %p2723_p2 = scmp.ne.s32.totalorder %s3112_s7, %s2722_s26  ;;  %p2726_p3 = scmp.lt.u32.totalorder %s2722_s26, %s3112_s7 }
  0x29   :  { %p2728_p4 = pnand %p2726_p3, %p2723_p2 }
  0x2b   :  { %2731 = shalt.err (!%p2728_p4)
}
  0x2c   :  { %s2732_s13 = scalar_lea.vmem %s89_s30, 2048  ;;  %p2737_p6 = scmp.lt.s32.totalorder %s89_s30, %s89_s30 }
  0x2d   :  { %p2733_p5 = scmp.ne.s32.totalorder %s89_s30, %s2732_s13  ;;  %p2738_p7 = scmp.lt.s32.totalorder %s2732_s13, %s2732_s13 }
  0x2f   :  { %p2739_p8 = por %p2738_p7, %p2737_p6 }
  0x31   :  { %p2740_p9 = pnand %p2739_p8, %p2733_p5 }
  0x33   :  { %2743 = shalt.err (!%p2740_p9)
}
  0x34   :  { %94 = dma.hbm_to_vmem [thread:$0]  %s3112_s7, 2048, %s89_s30, [#allocation11], %s2841_s23, %s2841_s23, %s2842_s24  }
  0x35   :  { %s2847_s15 = smov [#allocation2]   ;;  %s2744_s3 = scalar_lea.hbm %s3107_s2, 8192 }
  0x36   :  { %s28_s16 = sshll.u32 %s2847_s15, 4  ;;  %p2745_p10 = scmp.ne.s32.totalorder %s3107_s2, %s2744_s3  ;;  %s29_s16 = int_to_ptr.vmem [resolvable:$true] %s28_s16 }
  0x37   :  { %p2748_p11 = scmp.lt.u32.totalorder %s2744_s3, %s3107_s2 }
  0x39   :  { %p2750_p12 = pnand %p2748_p11, %p2745_p10 }
  0x3b   :  { %2753 = shalt.err (!%p2750_p12)
}
  0x3c   :  { %s2754_s26 = scalar_lea.vmem %s29_s16, 8192  ;;  %p2759_p0 = scmp.lt.s32.totalorder %s29_s16, %s29_s16 }
  0x3d   :  { %p2755_p13 = scmp.ne.s32.totalorder %s29_s16, %s2754_s26  ;;  %p2760_p1 = scmp.lt.s32.totalorder %s2754_s26, %s2754_s26 }
  0x3f   :  { %p2761_p2 = por %p2760_p1, %p2759_p0 }
  0x41   :  { %p2762_p3 = pnand %p2761_p2, %p2755_p13 }
  0x43   :  { %2765 = shalt.err (!%p2762_p3)
}
  0x44   :  { %s2848_s7 = smov 256   ;;  %s2849_s30 = smov 16  }
  0x45   :  { %34 = dma.hbm_to_vmem [thread:$0]  %s3107_s2, 8192, %s29_s16, [#allocation3], %s2848_s7, %s2848_s7, %s2849_s30  }
  0x46   :  { %s2850_s11 = smov [#allocation6]   ;;  %s2851_s13 = smov [#allocation9]  }
  0x47   :  { %s52_s12 = sshll.u32 %s2850_s11, 4  ;;  %s76_s5 = sshll.u32 %s2851_s13, 4  ;;  %s53_s12 = int_to_ptr.vmem [resolvable:$true] %s52_s12  ;;  %s2968_s5 = int_to_ptr.vmem [resolvable:$true] %s76_s5 }
  0x48   :  { %s2766_s17 = scalar_lea.hbm %s3109_s4, 2048 }
  0x49   :  { %p2767_p4 = scmp.ne.s32.totalorder %s3109_s4, %s2766_s17  ;;  %p2770_p5 = scmp.lt.u32.totalorder %s2766_s17, %s3109_s4 }
  0x4b   :  { %p2772_p6 = pnand %p2770_p5, %p2767_p4 }
  0x4d   :  { %2775 = shalt.err (!%p2772_p6)
}
  0x4e   :  { %s2776_s2 = scalar_lea.vmem %s53_s12, 2048  ;;  %p2781_p8 = scmp.lt.s32.totalorder %s53_s12, %s53_s12 }
  0x4f   :  { %p2777_p7 = scmp.ne.s32.totalorder %s53_s12, %s2776_s2  ;;  %p2782_p9 = scmp.lt.s32.totalorder %s2776_s2, %s2776_s2 }
  0x51   :  { %p2783_p10 = por %p2782_p9, %p2781_p8 }
  0x53   :  { %p2784_p11 = pnand %p2783_p10, %p2777_p7 }
  0x55   :  { %2787 = shalt.err (!%p2784_p11)
}
  0x56   :  { %58 = dma.hbm_to_vmem [thread:$0]  %s3109_s4, 2048, %s53_s12, [#allocation5], %s2845_s14, %s2845_s14, %s2846_s19  }
  0x57   :  { %s2788_s7 = scalar_lea.hbm %s3111_s6, 1024 }
  0x58   :  { %p2789_p12 = scmp.ne.s32.totalorder %s3111_s6, %s2788_s7  ;;  %p2792_p13 = scmp.lt.u32.totalorder %s2788_s7, %s3111_s6 }
  0x5a   :  { %p2794_p0 = pnand %p2792_p13, %p2789_p12 }
  0x5c   :  { %2797 = shalt.err (!%p2794_p0)
}
  0x5d   :  { %s2798_s13 = scalar_lea.vmem %s2968_s5, 1024  ;;  %p2803_p2 = scmp.lt.s32.totalorder %s2968_s5, %s2968_s5 }
  0x5e   :  { %p2799_p1 = scmp.ne.s32.totalorder %s2968_s5, %s2798_s13  ;;  %p2804_p3 = scmp.lt.s32.totalorder %s2798_s13, %s2798_s13 }
  0x60   :  { %p2805_p4 = por %p2804_p3, %p2803_p2 }
  0x62   :  { %p2806_p5 = pnand %p2805_p4, %p2799_p1 }
  0x64   :  { %2809 = shalt.err (!%p2806_p5)
}
  0x65   :  { %82 = dma.hbm_to_vmem [thread:$0]  %s3111_s6, 1024, %s2968_s5, [#allocation8], %s2845_s14, %s2845_s14, %s2846_s19  }
  0x66   :  { %s2852_s28 = smov [#allocation12]   ;;  %s2810_s3 = scalar_lea.hbm %s3113_s8, 4096 }
  0x67   :  { %s100_s15 = sshll.u32 %s2852_s28, 4  ;;  %p2811_p6 = scmp.ne.s32.totalorder %s3113_s8, %s2810_s3  ;;  %s101_s15 = int_to_ptr.vmem [resolvable:$true] %s100_s15 }
  0x68   :  { %p2814_p7 = scmp.lt.u32.totalorder %s2810_s3, %s3113_s8 }
  0x6a   :  { %p2816_p8 = pnand %p2814_p7, %p2811_p6 }
  0x6c   :  { %2819 = shalt.err (!%p2816_p8)
}
  0x6d   :  { %s2820_s22 = scalar_lea.vmem %s101_s15, 4096  ;;  %p2825_p10 = scmp.lt.s32.totalorder %s101_s15, %s101_s15 }
  0x6e   :  { %p2821_p9 = scmp.ne.s32.totalorder %s101_s15, %s2820_s22  ;;  %p2826_p11 = scmp.lt.s32.totalorder %s2820_s22, %s2820_s22 }
  0x70   :  { %p2827_p12 = por %p2826_p11, %p2825_p10 }
  0x72   :  { %p2828_p13 = pnand %p2827_p12, %p2821_p9 }
  0x74   :  { %2831 = shalt.err (!%p2828_p13)
}
  0x75   :  { %106 = dma.hbm_to_vmem [thread:$0]  %s3113_s8, 4096, %s101_s15, [#allocation11], %s2841_s23, %s2841_s23, %s2842_s24  }
  0x76   :  { %2832 = dma.done.wait [#allocation3], 8192  }
  0x77   :  { %2833 = vsyncadd [#allocation3], 4294959104 }
  0x78   :  { %2834 = dma.done.wait [#allocation5], 10240  }
  0x79   :  { %2835 = vsyncadd [#allocation5], 4294957056 }
  0x7a   :  { %2836 = dma.done.wait [#allocation8], 2048  }
  0x7b   :  { %2837 = vsyncadd [#allocation8], 4294965248 }
  0x7c   :  { %2838 = dma.done.wait [#allocation11], 6144  }
  0x7d   :  { %2839 = vsyncadd [#allocation11], 4294961152  ;;  %v2853_v0 = vmov 0   ;;  %v133_v1 = vld [vmem:[%s3106_s1] sm:$0xff]  ;;  %vm155_vm0 = vcmask 1043456   ;;  %vm151_vm1 = vcmask 64512  }
  0x7e   :  { %194 = vmatprep.mubr.bf16.mxu0 %v2853_v0  ;;  %v131_v2 = vld [vmem:[%s3105_s0] sm:$0xff]  ;;  %v2047_v3 = vcombine.high %v133_v1, %v133_v1  ;;  %v2046_v4 = vcombine.low %v133_v1, %v133_v1  ;;  %v2368_v6 = vld [vmem:[#allocation2 + $0x8] ss:$16 sps:$4 sm:$0xff]   ;;  %v2370_v7 = vld [vmem:[#allocation2 + $0xc] ss:$16 sps:$4 sm:$0xff]   ;;  %vm2855_vm2 = vmmov 0  }
  0x7f   :  { %v2366_v5 = vld [vmem:[#allocation2 + $0x4] ss:$16 sps:$4 sm:$0xff]   ;;  %v132_v9 = vpack.c.bf16 %v131_v2, %v131_v2  ;;  %v2371_v10 = vld [vmem:[#allocation2] ss:$16 sps:$4 sm:$0xff]   ;;  %v2376_v12 = vld [vmem:[#allocation2 + $0x2c] ss:$16 sps:$4 sm:$0xff]  }
  0x80   :  { %2048 = vmatprep.subr.msk.bf16.mxu0 %vm155_vm0, %v2047_v3  ;;  %v157_v8 = vsel %vm155_vm0, %v2046_v4, 0  ;;  %630 = vmatprep.subr.bf16.mxu1 %v2366_v5  ;;  %v2372_v11 = vld [vmem:[#allocation2 + $0x24] ss:$16 sps:$4 sm:$0xff]   ;;  %v2377_v13 = vld [vmem:[#allocation2 + $0x20] ss:$16 sps:$4 sm:$0xff]  }
  0x81   :  { %163 = vmatpush1.bf16.msra.mxu0 %v157_v8  ;;  %631 = vmatpush1.bf16.msra.mxu1 %v2371_v10  ;;  %v2378_v14 = vld [vmem:[#allocation2 + $0x44] ss:$16 sps:$4 sm:$0xff]   ;;  %v2374_v15 = vld [vmem:[#allocation2 + $0x28] ss:$16 sps:$4 sm:$0xff]   ;;  %v2382_v16 = vld [vmem:[#allocation2 + $0x4c] ss:$16 sps:$4 sm:$0xff]  }
  0x82   :  { %671 = vmatprep.subr.bf16.mxu0 %v2370_v7  ;;  %632 = vmatprep.subr.bf16.mxu1 %v2372_v11  ;;  %v2383_v17 = vld [vmem:[#allocation2 + $0x40] ss:$16 sps:$4 sm:$0xff]   ;;  %v2384_v18 = vld [vmem:[#allocation2 + $0x64] ss:$16 sps:$4 sm:$0xff]   ;;  %v2380_v19 = vld [vmem:[#allocation2 + $0x48] ss:$16 sps:$4 sm:$0xff]  }
  0x83   :  { %v2388_v20 = vld [vmem:[#allocation2 + $0x6c] ss:$16 sps:$4 sm:$0xff]   ;;  %v2389_v21 = vld [vmem:[#allocation2 + $0x60] ss:$16 sps:$4 sm:$0xff]   ;;  %v2390_v22 = vld [vmem:[#allocation2 + $0x84] ss:$16 sps:$4 sm:$0xff]  }
  0x84   :  { %2049 = vmatmul.mubr.msk.bf16.vlgmr.msra.gmra.mrb[0].mxu0 %vm151_vm1, %v132_v9  ;;  %v2386_v23 = vld [vmem:[#allocation2 + $0x68] ss:$16 sps:$4 sm:$0xff]   ;;  %v2394_v24 = vld [vmem:[#allocation2 + $0x8c] ss:$16 sps:$4 sm:$0xff]   ;;  %v2395_v25 = vld [vmem:[#allocation2 + $0x80] ss:$16 sps:$4 sm:$0xff]   ;;  %v136_v9 = vlaneseq }
  0x85   :  { %672 = vmatpush1.bf16.msra.mxu0 %v2368_v6  ;;  %633 = vmatpush1.bf16.msra.mxu1 %v2377_v13  ;;  %v2396_v26 = vld [vmem:[#allocation2 + $0xa4] ss:$16 sps:$4 sm:$0xff]   ;;  %v2392_v27 = vld [vmem:[#allocation2 + $0x88] ss:$16 sps:$4 sm:$0xff]   ;;  %v2400_v28 = vld [vmem:[#allocation2 + $0xac] ss:$16 sps:$4 sm:$0xff]  }
  0x86   :  { %673 = vmatprep.subr.bf16.mxu0 %v2376_v12  ;;  %634 = vmatprep.subr.bf16.mxu1 %v2378_v14  ;;  %v2401_v29 = vld [vmem:[#allocation2 + $0xa0] ss:$16 sps:$4 sm:$0xff]   ;;  %v2398_v30 = vld [vmem:[#allocation2 + $0xa8] ss:$16 sps:$4 sm:$0xff]   ;;  %v2402_v31 = vld [vmem:[#allocation2 + $0xc4] ss:$16 sps:$4 sm:$0xff]  }
  0x87   :  { %v2406_v32 = vld [vmem:[#allocation2 + $0xcc] ss:$16 sps:$4 sm:$0xff]   ;;  %v2407_v33 = vld [vmem:[#allocation2 + $0xc0] ss:$16 sps:$4 sm:$0xff]   ;;  %v2408_v34 = vld [vmem:[#allocation2 + $0xe4] ss:$16 sps:$4 sm:$0xff]  }
  0x88   :  { %v2404_v35 = vld [vmem:[#allocation2 + $0xc8] ss:$16 sps:$4 sm:$0xff]   ;;  %v2412_v36 = vld [vmem:[#allocation2 + $0xec] ss:$16 sps:$4 sm:$0xff]   ;;  %v2413_v37 = vld [vmem:[#allocation2 + $0xe0] ss:$16 sps:$4 sm:$0xff]  }
  0x89   :  { %674 = vmatpush1.bf16.msra.mxu0 %v2374_v15  ;;  %635 = vmatpush1.bf16.msra.mxu1 %v2383_v17  ;;  %v2410_v38 = vld [vmem:[#allocation2 + $0xe8] ss:$16 sps:$4 sm:$0xff]   ;;  %v2414_v39 = vld [vmem:[#allocation2 + $0x104] ss:$16 sps:$4 sm:$0xff]   ;;  %v2418_v40 = vld [vmem:[#allocation2 + $0x10c] ss:$16 sps:$4 sm:$0xff]  }
  0x8a   :  { %675 = vmatprep.subr.bf16.mxu0 %v2382_v16  ;;  %636 = vmatprep.subr.bf16.mxu1 %v2384_v18  ;;  %v2416_v41 = vld [vmem:[#allocation2 + $0x108] ss:$16 sps:$4 sm:$0xff]   ;;  %v2419_v42 = vld [vmem:[#allocation2 + $0x100] ss:$16 sps:$4 sm:$0xff]   ;;  %v2420_v43 = vld [vmem:[#allocation2 + $0x124] ss:$16 sps:$4 sm:$0xff]  }
  0x8b   :  { %v2424_v44 = vld [vmem:[#allocation2 + $0x12c] ss:$16 sps:$4 sm:$0xff]   ;;  %v2422_v45 = vld [vmem:[#allocation2 + $0x128] ss:$16 sps:$4 sm:$0xff]   ;;  %v2425_v46 = vld [vmem:[#allocation2 + $0x120] ss:$16 sps:$4 sm:$0xff]  }
  0x8c   :  { %v2426_v47 = vld [vmem:[#allocation2 + $0x144] ss:$16 sps:$4 sm:$0xff]   ;;  %v2430_v48 = vld [vmem:[#allocation2 + $0x14c] ss:$16 sps:$4 sm:$0xff]   ;;  %v2428_v49 = vld [vmem:[#allocation2 + $0x148] ss:$16 sps:$4 sm:$0xff]  }
  0x8d   :  { %676 = vmatpush1.bf16.msra.mxu0 %v2380_v19  ;;  %637 = vmatpush1.bf16.msra.mxu1 %v2389_v21  ;;  %v2431_v50 = vld [vmem:[#allocation2 + $0x140] ss:$16 sps:$4 sm:$0xff]   ;;  %v2432_v51 = vld [vmem:[#allocation2 + $0x164] ss:$16 sps:$4 sm:$0xff]   ;;  %v2436_v52 = vld [vmem:[#allocation2 + $0x16c] ss:$16 sps:$4 sm:$0xff]  }
  0x8e   :  { %677 = vmatprep.subr.bf16.mxu0 %v2388_v20  ;;  %638 = vmatprep.subr.bf16.mxu1 %v2390_v22  ;;  %v2434_v53 = vld [vmem:[#allocation2 + $0x168] ss:$16 sps:$4 sm:$0xff]   ;;  %v2437_v54 = vld [vmem:[#allocation2 + $0x160] ss:$16 sps:$4 sm:$0xff]   ;;  %v2438_v55 = vld [vmem:[#allocation2 + $0x184] ss:$16 sps:$4 sm:$0xff]  }
  0x8f   :  { %v2442_v56 = vld [vmem:[#allocation2 + $0x18c] ss:$16 sps:$4 sm:$0xff]   ;;  %v2440_v57 = vld [vmem:[#allocation2 + $0x188] ss:$16 sps:$4 sm:$0xff]   ;;  %v2443_v58 = vld [vmem:[#allocation2 + $0x180] ss:$16 sps:$4 sm:$0xff]  }
  0x90   :  { %v2444_v59 = vld [vmem:[#allocation2 + $0x1a4] ss:$16 sps:$4 sm:$0xff]   ;;  %v2448_v60 = vld [vmem:[#allocation2 + $0x1ac] ss:$16 sps:$4 sm:$0xff]   ;;  %v2446_v61 = vld [vmem:[#allocation2 + $0x1a8] ss:$16 sps:$4 sm:$0xff]  }
  0x91   :  { %678 = vmatpush1.bf16.msra.mxu0 %v2386_v23  ;;  %639 = vmatpush1.bf16.msra.mxu1 %v2395_v25  ;;  %v2449_v62 = vld [vmem:[#allocation2 + $0x1a0] ss:$16 sps:$4 sm:$0xff]   ;;  %v2450_v63 = vld [vmem:[#allocation2 + $0x1c4] ss:$16 sps:$4 sm:$0xff]   ;;  %v2454_v1 = vld [vmem:[#allocation2 + $0x1cc] ss:$16 sps:$4 sm:$0xff]  }
  0x92   :  { %679 = vmatprep.subr.bf16.mxu0 %v2394_v24  ;;  %640 = vmatprep.subr.bf16.mxu1 %v2396_v26  ;;  %v2452_v2 = vld [vmem:[#allocation2 + $0x1c8] ss:$16 sps:$4 sm:$0xff]   ;;  %v2455_v3 = vld [vmem:[#allocation2 + $0x1c0] ss:$16 sps:$4 sm:$0xff]   ;;  %v2456_v4 = vld [vmem:[#allocation2 + $0x1e4] ss:$16 sps:$4 sm:$0xff]  }
  0x93   :  { %v2460_v5 = vld [vmem:[#allocation2 + $0x1ec] ss:$16 sps:$4 sm:$0xff]   ;;  %v2458_v6 = vld [vmem:[#allocation2 + $0x1e8] ss:$16 sps:$4 sm:$0xff]   ;;  %v2461_v7 = vld [vmem:[#allocation2 + $0x1e0] ss:$16 sps:$4 sm:$0xff]  }
  0x94   :  { %v2464_v8 = vld [vmem:[#allocation4 + $0x4] ss:$8 sps:$4 sm:$0xff]   ;;  %v3027_v10 = vshrl.u32 %v136_v9, 7  ;;  %v134_v12 = vld [vmem:[%s3114_s9] ss:$8 sm:$0x3] }
  0x95   :  { %680 = vmatpush1.bf16.msra.mxu0 %v2392_v27  ;;  %641 = vmatpush1.bf16.msra.mxu1 %v2401_v29  ;;  %v2507_v9 = vld [vmem:[#allocation4 + $0xf0] ss:$8 sps:$4 sm:$0xff]  }
  0x96   :  { %681 = vmatprep.subr.bf16.mxu0 %v2400_v28  ;;  %642 = vmatprep.subr.bf16.mxu1 %v2402_v31  ;;  %v3030_v11 = vsub.s32 0, %v3027_v10  ;;  %v3036_v13 = vsub.s32 1, %v3027_v10 }
  0x98   :  { %v139_v14 = vrot.slane %v134_v12, %v3030_v11  ;;  %v143_v15 = vrot.slane %v134_v12, %v3036_v13  ;;  %v2512_v12 = vld [vmem:[#allocation4 + $0x104] ss:$8 sps:$4 sm:$0xff]  }
  0x99   :  { %682 = vmatpush1.bf16.msra.mxu0 %v2398_v30  ;;  %643 = vmatpush1.bf16.msra.mxu1 %v2407_v33 }
  0x9a   :  { %683 = vmatprep.subr.bf16.mxu0 %v2406_v32  ;;  %644 = vmatprep.subr.bf16.mxu1 %v2408_v34 }
  0x9d   :  { %684 = vmatpush1.bf16.msra.mxu0 %v2404_v35  ;;  %645 = vmatpush1.bf16.msra.mxu1 %v2413_v37 }
  0x9e   :  { %685 = vmatprep.subr.bf16.mxu0 %v2412_v36  ;;  %646 = vmatprep.subr.bf16.mxu1 %v2414_v39 }
  0xa1   :  { %686 = vmatpush1.bf16.msra.mxu0 %v2410_v38  ;;  %647 = vmatpush1.bf16.msra.mxu1 %v2419_v42 }
  0xa2   :  { %687 = vmatprep.subr.bf16.mxu0 %v2418_v40  ;;  %648 = vmatprep.subr.bf16.mxu1 %v2420_v43  ;;  %v2467_v43 = vld [vmem:[#allocation4 + $0x14] ss:$8 sps:$4 sm:$0xff]  }
  0xa5   :  { %688 = vmatpush1.bf16.msra.mxu0 %v2416_v41  ;;  %649 = vmatpush1.bf16.msra.mxu1 %v2425_v46  ;;  %v2462_v41 = vld [vmem:[#allocation4] ss:$8 sps:$4 sm:$0xff]  }
  0xa6   :  { %689 = vmatprep.subr.bf16.mxu0 %v2424_v44  ;;  %650 = vmatprep.subr.bf16.mxu1 %v2426_v47  ;;  %v2465_v44 = vld [vmem:[#allocation4 + $0x10] ss:$8 sps:$4 sm:$0xff]   ;;  %v2468_v46 = vld [vmem:[#allocation4 + $0x20] ss:$8 sps:$4 sm:$0xff]   ;;  %v2473_v47 = vld [vmem:[#allocation4 + $0x34] ss:$8 sps:$4 sm:$0xff]  }
  0xa9   :  { %690 = vmatpush1.bf16.msra.mxu0 %v2422_v45  ;;  %651 = vmatpush1.bf16.msra.mxu1 %v2431_v50  ;;  %v2470_v45 = vld [vmem:[#allocation4 + $0x24] ss:$8 sps:$4 sm:$0xff]   ;;  %v2474_v50 = vld [vmem:[#allocation4 + $0x40] ss:$8 sps:$4 sm:$0xff]  }
  0xaa   :  { %691 = vmatprep.subr.bf16.mxu0 %v2430_v48  ;;  %652 = vmatprep.subr.bf16.mxu1 %v2432_v51  ;;  %v2471_v48 = vld [vmem:[#allocation4 + $0x30] ss:$8 sps:$4 sm:$0xff]   ;;  %v2479_v51 = vld [vmem:[#allocation4 + $0x54] ss:$8 sps:$4 sm:$0xff]  }
  0xad   :  { %692 = vmatpush1.bf16.msra.mxu0 %v2428_v49  ;;  %653 = vmatpush1.bf16.msra.mxu1 %v2437_v54  ;;  %v2476_v49 = vld [vmem:[#allocation4 + $0x44] ss:$8 sps:$4 sm:$0xff]   ;;  %v2480_v54 = vld [vmem:[#allocation4 + $0x60] ss:$8 sps:$4 sm:$0xff]  }
  0xae   :  { %693 = vmatprep.subr.bf16.mxu0 %v2436_v52  ;;  %654 = vmatprep.subr.bf16.mxu1 %v2438_v55  ;;  %v2477_v52 = vld [vmem:[#allocation4 + $0x50] ss:$8 sps:$4 sm:$0xff]   ;;  %v2485_v55 = vld [vmem:[#allocation4 + $0x74] ss:$8 sps:$4 sm:$0xff]  }
  0xb1   :  { %694 = vmatpush1.bf16.msra.mxu0 %v2434_v53  ;;  %655 = vmatpush1.bf16.msra.mxu1 %v2443_v58  ;;  %v2482_v53 = vld [vmem:[#allocation4 + $0x64] ss:$8 sps:$4 sm:$0xff]   ;;  %v2486_v58 = vld [vmem:[#allocation4 + $0x80] ss:$8 sps:$4 sm:$0xff]  }
  0xb2   :  { %695 = vmatprep.subr.bf16.mxu0 %v2442_v56  ;;  %656 = vmatprep.subr.bf16.mxu1 %v2444_v59  ;;  %v2483_v56 = vld [vmem:[#allocation4 + $0x70] ss:$8 sps:$4 sm:$0xff]   ;;  %v2491_v59 = vld [vmem:[#allocation4 + $0x94] ss:$8 sps:$4 sm:$0xff]  }
  0xb5   :  { %696 = vmatpush1.bf16.msra.mxu0 %v2440_v57  ;;  %657 = vmatpush1.bf16.msra.mxu1 %v2449_v62  ;;  %v2488_v57 = vld [vmem:[#allocation4 + $0x84] ss:$8 sps:$4 sm:$0xff]   ;;  %v2492_v62 = vld [vmem:[#allocation4 + $0xa0] ss:$8 sps:$4 sm:$0xff]  }
  0xb6   :  { %697 = vmatprep.subr.bf16.mxu0 %v2448_v60  ;;  %658 = vmatprep.subr.bf16.mxu1 %v2450_v63  ;;  %v2489_v60 = vld [vmem:[#allocation4 + $0x90] ss:$8 sps:$4 sm:$0xff]   ;;  %v2497_v63 = vld [vmem:[#allocation4 + $0xb4] ss:$8 sps:$4 sm:$0xff]  }
  0xb9   :  { %698 = vmatpush1.bf16.msra.mxu0 %v2446_v61  ;;  %659 = vmatpush1.bf16.msra.mxu1 %v2455_v3  ;;  %v2494_v61 = vld [vmem:[#allocation4 + $0xa4] ss:$8 sps:$4 sm:$0xff]  }
  0xba   :  { %699 = vmatprep.subr.bf16.mxu0 %v2454_v1  ;;  %660 = vmatprep.subr.bf16.mxu1 %v2456_v4  ;;  %v2495_v1 = vld [vmem:[#allocation4 + $0xb0] ss:$8 sps:$4 sm:$0xff]   ;;  %v2500_v3 = vld [vmem:[#allocation4 + $0xc4] ss:$8 sps:$4 sm:$0xff]   ;;  %v2503_v4 = vld [vmem:[#allocation4 + $0xd4] ss:$8 sps:$4 sm:$0xff]  }
  0xbd   :  { %700 = vmatpush1.bf16.msra.mxu0 %v2452_v2  ;;  %661 = vmatpush1.bf16.msra.mxu1 %v2461_v7  ;;  %v2498_v2 = vld [vmem:[#allocation4 + $0xc0] ss:$8 sps:$4 sm:$0xff]  }
  0xbe   :  { %701 = vmatprep.subr.bf16.mxu0 %v2460_v5  ;;  %1149 = vmatprep.subr.bf16.mxu1 %v2464_v8  ;;  %v2501_v5 = vld [vmem:[#allocation4 + $0xd0] ss:$8 sps:$4 sm:$0xff]   ;;  %v2504_v7 = vld [vmem:[#allocation4 + $0xe0] ss:$8 sps:$4 sm:$0xff]   ;;  %v2509_v8 = vld [vmem:[#allocation4 + $0xf4] ss:$8 sps:$4 sm:$0xff]  }
  0xc1   :  { %702 = vmatpush1.bf16.msra.mxu0 %v2458_v6  ;;  %v2506_v6 = vld [vmem:[#allocation4 + $0xe4] ss:$8 sps:$4 sm:$0xff]  }
 0x157   :  { %v196_v16 = vpop.f32.mrb[0].mxu0 }
 0x158   :  { %v197_v17 = vadd.f32 %v196_v16, %v139_v14  ;;  %v198_v18 = vpop.f32.mrb[1].mxu0  ;;  %v3043_v14 = vld [vmem:[%s3114_s9 + $0x1] ss:$8 sm:$0xf] }
 0x159   :  { %v199_v19 = vadd.f32 %v198_v18, %v143_v15  ;;  %v200_v20 = vpop.f32.mrb[2].mxu0  ;;  %v304_v15 = vsub.s32 3, %v3027_v10  ;;  %v293_v16 = vrot.slane %v3043_v14, %v3030_v11 }
 0x15a   :  { %v205_v21 = vmul.f32 %v197_v17, %v197_v17  ;;  %v201_v22 = vpop.f32.mrb[3].mxu0  ;;  %v203_v34 = vmul.f32 0.5, %v197_v17 }
 0x15b   :  { %v206_v23 = vmul.f32 %v199_v19, %v199_v19  ;;  %v204_v36 = vmul.f32 0.5, %v199_v19  ;;  %v305_v18 = vrot.slane %v3043_v14, %v304_v15  ;;  %v2530_v15 = vld [vmem:[#allocation4 + $0x164] ss:$8 sps:$4 sm:$0xff]  }
 0x15c   :  { %v207_v24 = vmul.f32 %v205_v21, %v197_v17 }
 0x15d   :  { %v208_v25 = vmul.f32 %v206_v23, %v199_v19 }
 0x15e   :  { %v209_v26 = vmul.f32 0.044715, %v207_v24 }
 0x15f   :  { %v210_v27 = vmul.f32 0.044715, %v208_v25 }
 0x160   :  { %v211_v28 = vadd.f32 %v209_v26, %v197_v17  ;;  %v297_v17 = vrot.slane %v3043_v14, %v3036_v13 }
 0x161   :  { %v212_v29 = vadd.f32 %v210_v27, %v199_v19 }
 0x162   :  { %v213_v30 = vmul.f32 0.7978846, %v211_v28 }
 0x163   :  { %v214_v31 = vmul.f32 0.7978846, %v212_v29 }
 0x164   :  { %2662 = vtanh.f32 %v213_v30 }
 0x165   :  { %2664 = vtanh.f32 %v214_v31 }
 0x16e   :  { %v2663_v32 = vpop.eup %2662 }
 0x16f   :  { %v2665_v33 = vpop.eup %2664  ;;  %v217_v35 = vadd.f32 1.0, %v2663_v32 }
 0x170   :  { %v218_v37 = vadd.f32 1.0, %v2665_v33 }
 0x171   :  { %v219_v38 = vmul.f32 %v217_v35, %v203_v34 }
 0x172   :  { %v220_v39 = vmul.f32 %v218_v37, %v204_v36 }
 0x173   :  { %v221_v42 = vpack.c.bf16 %v219_v38, %v219_v38 }
 0x174   :  { %v222_v40 = vpack.c.bf16 %v220_v39, %v220_v39 }
 0x176   :  { %662 = vmatprep.mubr.bf16.mxu1 %v222_v40  ;;  %703 = vmatprep.mubr.bf16.mxu0 %v222_v40 }
 0x177   :  { %663 = vmatmul.mubr.bf16.vlgmr.msra.gmra.mrb[0].mxu1 %v221_v42  ;;  %704 = vmatmul.mubr.bf16.vlgmr.msra.gmra.mrb[4].mxu0 %v221_v42 }
 0x178   :  { %1150 = vmatpush1.bf16.msra.mxu1 %v2462_v41 }
 0x179   :  { %1151 = vmatprep.subr.bf16.mxu1 %v2467_v43 }
 0x17c   :  { %1152 = vmatpush1.bf16.msra.mxu1 %v2465_v44 }
 0x17d   :  { %1153 = vmatprep.subr.bf16.mxu1 %v2470_v45 }
 0x180   :  { %1154 = vmatpush1.bf16.msra.mxu1 %v2468_v46 }
 0x181   :  { %1155 = vmatprep.subr.bf16.mxu1 %v2473_v47 }
 0x184   :  { %1156 = vmatpush1.bf16.msra.mxu1 %v2471_v48 }
 0x185   :  { %1157 = vmatprep.subr.bf16.mxu1 %v2476_v49 }
 0x188   :  { %1158 = vmatpush1.bf16.msra.mxu1 %v2474_v50 }
 0x189   :  { %1159 = vmatprep.subr.bf16.mxu1 %v2479_v51 }
 0x18c   :  { %1160 = vmatpush1.bf16.msra.mxu1 %v2477_v52 }
 0x18d   :  { %1161 = vmatprep.subr.bf16.mxu1 %v2482_v53 }
 0x190   :  { %1162 = vmatpush1.bf16.msra.mxu1 %v2480_v54 }
 0x191   :  { %1163 = vmatprep.subr.bf16.mxu1 %v2485_v55 }
 0x194   :  { %1164 = vmatpush1.bf16.msra.mxu1 %v2483_v56 }
 0x195   :  { %1165 = vmatprep.subr.bf16.mxu1 %v2488_v57 }
 0x198   :  { %1166 = vmatpush1.bf16.msra.mxu1 %v2486_v58  ;;  %v2510_v58 = vld [vmem:[#allocation4 + $0x100] ss:$8 sps:$4 sm:$0xff]  }
 0x199   :  { %1167 = vmatprep.subr.bf16.mxu1 %v2491_v59 }
 0x19c   :  { %1168 = vmatpush1.bf16.msra.mxu1 %v2489_v60  ;;  %v2515_v60 = vld [vmem:[#allocation4 + $0x114] ss:$8 sps:$4 sm:$0xff]  }
 0x19d   :  { %1169 = vmatprep.subr.bf16.mxu1 %v2494_v61 }
 0x1a0   :  { %1170 = vmatpush1.bf16.msra.mxu1 %v2492_v62  ;;  %v2513_v62 = vld [vmem:[#allocation4 + $0x110] ss:$8 sps:$4 sm:$0xff]  }
 0x1a1   :  { %1171 = vmatprep.subr.bf16.mxu1 %v2497_v63  ;;  %v2518_v63 = vld [vmem:[#allocation4 + $0x124] ss:$8 sps:$4 sm:$0xff]  }
 0x1a4   :  { %1172 = vmatpush1.bf16.msra.mxu1 %v2495_v1  ;;  %v2516_v1 = vld [vmem:[#allocation4 + $0x120] ss:$8 sps:$4 sm:$0xff]  }
 0x1a5   :  { %1173 = vmatprep.subr.bf16.mxu1 %v2500_v3  ;;  %v300_v3 = vsub.s32 2, %v3027_v10  ;;  %v2533_v10 = vld [vmem:[#allocation4 + $0x174] ss:$8 sps:$4 sm:$0xff]  }
 0x1a8   :  { %1174 = vmatpush1.bf16.msra.mxu1 %v2498_v2  ;;  %v2521_v2 = vld [vmem:[#allocation4 + $0x134] ss:$8 sps:$4 sm:$0xff]  }
 0x1a9   :  { %1175 = vmatprep.subr.bf16.mxu1 %v2503_v4  ;;  %v2519_v4 = vld [vmem:[#allocation4 + $0x130] ss:$8 sps:$4 sm:$0xff]  }
 0x1ac   :  { %1176 = vmatpush1.bf16.msra.mxu1 %v2501_v5  ;;  %v2524_v5 = vld [vmem:[#allocation4 + $0x144] ss:$8 sps:$4 sm:$0xff]  }
 0x1ad   :  { %1177 = vmatprep.subr.bf16.mxu1 %v2506_v6  ;;  %v301_v6 = vrot.slane %v3043_v14, %v300_v3  ;;  %v2536_v14 = vld [vmem:[#allocation4 + $0x184] ss:$8 sps:$4 sm:$0xff]  }
 0x1b0   :  { %1178 = vmatpush1.bf16.msra.mxu1 %v2504_v7  ;;  %v2522_v7 = vld [vmem:[#allocation4 + $0x140] ss:$8 sps:$4 sm:$0xff]  }
 0x1b1   :  { %1179 = vmatprep.subr.bf16.mxu1 %v2509_v8  ;;  %v2527_v8 = vld [vmem:[#allocation4 + $0x154] ss:$8 sps:$4 sm:$0xff]  }
 0x1b4   :  { %1180 = vmatpush1.bf16.msra.mxu1 %v2507_v9 }
 0x1b5   :  { %1190 = vmatprep.subr.bf16.mxu1 %v2512_v12  ;;  %v2525_v12 = vld [vmem:[#allocation4 + $0x150] ss:$8 sps:$4 sm:$0xff]  }
 0x24a   :  { %v664_v19 = vpop.f32.mrb[0].mxu1  ;;  %v3051_v20 = vpop.f32.mrb[4].mxu0 }
 0x24b   :  { %v665_v21 = vadd.f32 %v664_v19, %v293_v16  ;;  %v666_v22 = vpop.f32.mrb[1].mxu1  ;;  %v707_v23 = vpop.f32.mrb[5].mxu0  ;;  %v706_v9 = vadd.f32 %v3051_v20, %v301_v6  ;;  %v2531_v19 = vld [vmem:[#allocation4 + $0x170] ss:$8 sps:$4 sm:$0xff]  }
 0x24c   :  { %v667_v24 = vadd.f32 %v666_v22, %v297_v17  ;;  %v708_v25 = vadd.f32 %v707_v23, %v305_v18  ;;  %v668_v26 = vpop.f32.mrb[2].mxu1  ;;  %v709_v27 = vpop.f32.mrb[6].mxu0  ;;  %v2528_v17 = vld [vmem:[#allocation4 + $0x160] ss:$8 sps:$4 sm:$0xff]   ;;  %v2539_v23 = vld [vmem:[#allocation4 + $0x194] ss:$8 sps:$4 sm:$0xff]  }
 0x24d   :  { %v716_v28 = vmul.f32 %v665_v21, %v665_v21  ;;  %v669_v29 = vpop.f32.mrb[3].mxu1  ;;  %v710_v30 = vpop.f32.mrb[7].mxu0  ;;  %v712_v48 = vmul.f32 0.5, %v665_v21  ;;  %v718_v16 = vmul.f32 %v706_v9, %v706_v9  ;;  %v2534_v22 = vld [vmem:[#allocation4 + $0x180] ss:$8 sps:$4 sm:$0xff]  }
 0x24e   :  { %v717_v31 = vmul.f32 %v667_v24, %v667_v24  ;;  %v719_v32 = vmul.f32 %v708_v25, %v708_v25  ;;  %v713_v50 = vmul.f32 0.5, %v667_v24  ;;  %v715_v53 = vmul.f32 0.5, %v708_v25  ;;  %v2540_v27 = vld [vmem:[#allocation4 + $0x1a0] ss:$8 sps:$4 sm:$0xff]   ;;  %v2543_v29 = vld [vmem:[#allocation4 + $0x1b0] ss:$8 sps:$4 sm:$0xff]  }
 0x24f   :  { %v720_v33 = vmul.f32 %v716_v28, %v665_v21  ;;  %v722_v18 = vmul.f32 %v718_v16, %v706_v9  ;;  %v2545_v28 = vld [vmem:[#allocation4 + $0x1b4] ss:$8 sps:$4 sm:$0xff]   ;;  %v2548_v30 = vld [vmem:[#allocation4 + $0x1c4] ss:$8 sps:$4 sm:$0xff]  }
 0x250   :  { %v721_v34 = vmul.f32 %v717_v31, %v667_v24  ;;  %v723_v35 = vmul.f32 %v719_v32, %v708_v25  ;;  %v2546_v31 = vld [vmem:[#allocation4 + $0x1c0] ss:$8 sps:$4 sm:$0xff]   ;;  %v2551_v32 = vld [vmem:[#allocation4 + $0x1d4] ss:$8 sps:$4 sm:$0xff]  }
 0x251   :  { %v724_v36 = vmul.f32 0.044715, %v720_v33  ;;  %v2549_v33 = vld [vmem:[#allocation4 + $0x1d0] ss:$8 sps:$4 sm:$0xff]  }
 0x252   :  { %v725_v37 = vmul.f32 0.044715, %v721_v34  ;;  %v727_v38 = vmul.f32 0.044715, %v723_v35  ;;  %v2554_v34 = vld [vmem:[#allocation4 + $0x1e4] ss:$8 sps:$4 sm:$0xff]  }
 0x253   :  { %v728_v39 = vadd.f32 %v724_v36, %v665_v21  ;;  %v726_v21 = vmul.f32 0.044715, %v722_v18  ;;  %v2552_v36 = vld [vmem:[#allocation4 + $0x1e0] ss:$8 sps:$4 sm:$0xff]  }
 0x254   :  { %v729_v40 = vadd.f32 %v725_v37, %v667_v24  ;;  %v731_v41 = vadd.f32 %v727_v38, %v708_v25  ;;  %v2537_v24 = vld [vmem:[#allocation4 + $0x190] ss:$8 sps:$4 sm:$0xff]   ;;  %v2542_v25 = vld [vmem:[#allocation4 + $0x1a4] ss:$8 sps:$4 sm:$0xff]   ;;  %v2557_v37 = vld [vmem:[#allocation4 + $0x1f4] ss:$8 sps:$4 sm:$0xff]  }
 0x255   :  { %v732_v42 = vmul.f32 0.7978846, %v728_v39  ;;  %v730_v20 = vadd.f32 %v726_v21, %v706_v9  ;;  %v714_v39 = vmul.f32 0.5, %v706_v9 }
 0x256   :  { %v733_v43 = vmul.f32 0.7978846, %v729_v40  ;;  %v735_v44 = vmul.f32 0.7978846, %v731_v41  ;;  %v2555_v40 = vld [vmem:[#allocation4 + $0x1f0] ss:$8 sps:$4 sm:$0xff]  }
 0x257   :  { %2666 = vtanh.f32 %v732_v42  ;;  %v734_v26 = vmul.f32 0.7978846, %v730_v20 }
 0x258   :  { %2668 = vtanh.f32 %v733_v43  ;;  %v2558_v43 = vld [vmem:[#allocation6 + $0x40] sm:$0xff]  }
 0x259   :  { %2670 = vtanh.f32 %v735_v44  ;;  %v2559_v44 = vld [vmem:[#allocation6] sm:$0xff]   ;;  %2262 = vmatprep.subr.bf16.mxu0 %v2558_v43 }
 0x25a   :  { %2672 = vtanh.f32 %v734_v26  ;;  %2263 = vmatpush3.bf16.msra.mxu0 %v2559_v44  ;;  %v2582_v44 = vld [vmem:[#allocation9] sm:$0xff]  }
 0x261   :  { %v2667_v45 = vpop.eup %2666 }
 0x262   :  { %v740_v46 = vadd.f32 1.0, %v2667_v45  ;;  %v2669_v47 = vpop.eup %2668  ;;  %v2560_v45 = vld [vmem:[#allocation6 + $0x48] sm:$0xff]  }
 0x263   :  { %v2671_v49 = vpop.eup %2670  ;;  %v741_v51 = vadd.f32 1.0, %v2669_v47  ;;  %2264 = vmatprep.subr.bf16.mxu0 %v2560_v45  ;;  %v2562_v47 = vld [vmem:[#allocation6 + $0x50] sm:$0xff]  }
 0x264   :  { %v744_v52 = vmul.f32 %v740_v46, %v712_v48  ;;  %v743_v54 = vadd.f32 1.0, %v2671_v49  ;;  %v2673_v35 = vpop.eup %2672  ;;  %v2561_v46 = vld [vmem:[#allocation6 + $0x8] sm:$0xff]   ;;  %v2563_v48 = vld [vmem:[#allocation6 + $0x10] sm:$0xff]   ;;  %v2564_v49 = vld [vmem:[#allocation6 + $0x58] sm:$0xff]  }
 0x265   :  { %v745_v55 = vmul.f32 %v741_v51, %v713_v50  ;;  %v742_v38 = vadd.f32 1.0, %v2673_v35  ;;  %2265 = vmatpush3.bf16.msra.mxu0 %v2561_v46  ;;  %v2565_v50 = vld [vmem:[#allocation6 + $0x18] sm:$0xff]   ;;  %v2566_v51 = vld [vmem:[#allocation6 + $0x60] sm:$0xff]   ;;  %v2583_v46 = vld [vmem:[#allocation9 + $0x8] sm:$0xff]  }
 0x266   :  { %v747_v56 = vmul.f32 %v743_v54, %v715_v53  ;;  %v748_v59 = vpack.c.bf16 %v744_v52, %v744_v52  ;;  %2266 = vmatprep.subr.bf16.mxu0 %v2562_v47  ;;  %v2567_v52 = vld [vmem:[#allocation6 + $0x20] sm:$0xff]   ;;  %v2568_v53 = vld [vmem:[#allocation6 + $0x68] sm:$0xff]   ;;  %v2581_v35 = vld [vmem:[#allocation7 + $0x38] sm:$0xff]  }
 0x267   :  { %v749_v57 = vpack.c.bf16 %v745_v55, %v745_v55  ;;  %v746_v41 = vmul.f32 %v742_v38, %v714_v39  ;;  %v2569_v54 = vld [vmem:[#allocation6 + $0x28] sm:$0xff]   ;;  %v2570_v55 = vld [vmem:[#allocation6 + $0x70] sm:$0xff]  }
 0x268   :  { %v751_v61 = vpack.c.bf16 %v747_v56, %v747_v56  ;;  %v2571_v56 = vld [vmem:[#allocation6 + $0x30] sm:$0xff]  }
 0x269   :  { %1181 = vmatprep.mubr.bf16.mxu1 %v749_v57  ;;  %v750_v42 = vpack.c.bf16 %v746_v41, %v746_v41  ;;  %2267 = vmatpush3.bf16.msra.mxu0 %v2563_v48  ;;  %v2572_v57 = vld [vmem:[#allocation6 + $0x78] sm:$0xff]   ;;  %v2584_v47 = vld [vmem:[#allocation9 + $0x10] sm:$0xff]  }
 0x26a   :  { %1182 = vmatmul.mubr.bf16.vlgmr.msra.gmra.mrb[4].mxu1 %v748_v59  ;;  %2268 = vmatprep.subr.bf16.mxu0 %v2564_v49  ;;  %v2854_v59 = vmov 0.0   ;;  %v2585_v48 = vld [vmem:[#allocation9 + $0x18] sm:$0xff]   ;;  %v2586_v49 = vld [vmem:[#allocation9 + $0x20] sm:$0xff]  }
 0x26b   :  { %1191 = vmatpush1.bf16.msra.mxu1 %v2510_v58  ;;  %1222 = vmatprep.mubr.bf16.mxu1 %v751_v61  ;;  %v2573_v58 = vld [vmem:[#allocation6 + $0x38] sm:$0xff]  }
 0x26c   :  { %1192 = vmatprep.subr.bf16.mxu1 %v2515_v60  ;;  %v2115_v60 = vld [vmem:[%s3114_s9 + $0x2] ss:$8 sm:$0x3] }
 0x26d   :  { %2269 = vmatpush3.bf16.msra.mxu0 %v2565_v50  ;;  %v822_v61 = vrot.slane %v2115_v60, %v3030_v11  ;;  %v2587_v50 = vld [vmem:[#allocation9 + $0x28] sm:$0xff]  }
 0x26e   :  { %2270 = vmatprep.subr.bf16.mxu0 %v2566_v51  ;;  %v2588_v51 = vld [vmem:[#allocation9 + $0x30] sm:$0xff]  }
 0x26f   :  { %1193 = vmatpush1.bf16.msra.mxu1 %v2513_v62  ;;  %v826_v62 = vrot.slane %v2115_v60, %v3036_v13 }
 0x270   :  { %1194 = vmatprep.subr.bf16.mxu1 %v2518_v63 }
 0x271   :  { %2271 = vmatpush3.bf16.msra.mxu0 %v2567_v52  ;;  %v2589_v52 = vld [vmem:[#allocation9 + $0x38] sm:$0xff]  }
 0x272   :  { %2272 = vmatprep.subr.bf16.mxu0 %v2568_v53  ;;  %v2592_v53 = vld [vmem:[#allocation10 + $0x4] ss:$8 sps:$4 sm:$0xff]  }
 0x273   :  { %1195 = vmatpush1.bf16.msra.mxu1 %v2516_v1 }
 0x274   :  { %1196 = vmatprep.subr.bf16.mxu1 %v2521_v2 }
 0x275   :  { %2273 = vmatpush3.bf16.msra.mxu0 %v2569_v54  ;;  %v1438_v54 = vld [vmem:[%s3114_s9 + $0x4] ss:$0 sm:$0xff] }
 0x276   :  { %2274 = vmatprep.subr.bf16.mxu0 %v2570_v55 }
 0x277   :  { %1197 = vmatpush1.bf16.msra.mxu1 %v2519_v4 }
 0x278   :  { %1198 = vmatprep.subr.bf16.mxu1 %v2524_v5 }
 0x279   :  { %2275 = vmatpush3.bf16.msra.mxu0 %v2571_v56 }
 0x27a   :  { %2276 = vmatprep.subr.bf16.mxu0 %v2572_v57 }
 0x27b   :  { %1199 = vmatpush1.bf16.msra.mxu1 %v2522_v7 }
 0x27c   :  { %1200 = vmatprep.subr.bf16.mxu1 %v2527_v8 }
 0x27d   :  { %2277 = vmatpush3.bf16.msra.mxu0 %v2573_v58 }
 0x27e   :  { %2302 = vmatprep.subr.bf16.mxu0 %v2854_v59 }
 0x27f   :  { %1201 = vmatpush1.bf16.msra.mxu1 %v2525_v12 }
 0x280   :  { %1202 = vmatprep.subr.bf16.mxu1 %v2530_v15 }
 0x283   :  { %1203 = vmatpush1.bf16.msra.mxu1 %v2528_v17 }
 0x284   :  { %1204 = vmatprep.subr.bf16.mxu1 %v2533_v10 }
 0x287   :  { %1205 = vmatpush1.bf16.msra.mxu1 %v2531_v19 }
 0x288   :  { %1206 = vmatprep.subr.bf16.mxu1 %v2536_v14 }
 0x28b   :  { %1207 = vmatpush1.bf16.msra.mxu1 %v2534_v22 }
 0x28c   :  { %1208 = vmatprep.subr.bf16.mxu1 %v2539_v23 }
 0x28f   :  { %1209 = vmatpush1.bf16.msra.mxu1 %v2537_v24 }
 0x290   :  { %1210 = vmatprep.subr.bf16.mxu1 %v2542_v25 }
 0x293   :  { %1211 = vmatpush1.bf16.msra.mxu1 %v2540_v27  ;;  %v2574_v27 = vld [vmem:[#allocation7] sm:$0xff]  }
 0x294   :  { %1212 = vmatprep.subr.bf16.mxu1 %v2545_v28 }
 0x297   :  { %1213 = vmatpush1.bf16.msra.mxu1 %v2543_v29  ;;  %v2575_v29 = vld [vmem:[#allocation7 + $0x8] sm:$0xff]  }
 0x298   :  { %1214 = vmatprep.subr.bf16.mxu1 %v2548_v30  ;;  %v2576_v30 = vld [vmem:[#allocation7 + $0x10] sm:$0xff]  }
 0x29b   :  { %1215 = vmatpush1.bf16.msra.mxu1 %v2546_v31  ;;  %v2577_v31 = vld [vmem:[#allocation7 + $0x18] sm:$0xff]  }
 0x29c   :  { %1216 = vmatprep.subr.bf16.mxu1 %v2551_v32  ;;  %v2578_v32 = vld [vmem:[#allocation7 + $0x20] sm:$0xff]  }
 0x29f   :  { %1217 = vmatpush1.bf16.msra.mxu1 %v2549_v33  ;;  %v2579_v33 = vld [vmem:[#allocation7 + $0x28] sm:$0xff]  }
 0x2a0   :  { %1218 = vmatprep.subr.bf16.mxu1 %v2554_v34  ;;  %v2580_v34 = vld [vmem:[#allocation7 + $0x30] sm:$0xff]  }
 0x2a3   :  { %1219 = vmatpush1.bf16.msra.mxu1 %v2552_v36 }
 0x2a4   :  { %1220 = vmatprep.subr.bf16.mxu1 %v2557_v37  ;;  %v1283_v37 = vld [vmem:[%s3114_s9 + $0x3] ss:$0 sm:$0xff] }
 0x2a7   :  { %1221 = vmatpush1.bf16.msra.mxu1 %v2555_v40 }
 0x2aa   :  { %1223 = vmatmul.mubr.bf16.vlgmr.msra.gmra.mrb[4].mxu1 %v750_v42 }
 0x37d   :  { %v1224_v63 = vpop.f32.mrb[4].mxu1 }
 0x37e   :  { %v2342_v1 = vadd.f32 %v1224_v63, %v822_v61  ;;  %v1226_v2 = vpop.f32.mrb[5].mxu1 }
 0x37f   :  { %v2343_v3 = vadd.f32 %v1226_v2, %v826_v62  ;;  %v1228_v4 = vpop.f32.mrb[6].mxu1  ;;  %v2590_v62 = vld [vmem:[#allocation10] ss:$8 sps:$4 sm:$0xff]   ;;  %v2598_v2 = vld [vmem:[#allocation10 + $0x24] ss:$8 sps:$4 sm:$0xff]  }
 0x380   :  { %v1233_v5 = vmul.f32 %v2342_v1, %v2342_v1  ;;  %v1229_v6 = vpop.f32.mrb[7].mxu1  ;;  %v1231_v21 = vmul.f32 0.5, %v2342_v1  ;;  %v2601_v4 = vld [vmem:[#allocation10 + $0x34] ss:$8 sps:$4 sm:$0xff]  }
 0x381   :  { %v1234_v7 = vmul.f32 %v2343_v3, %v2343_v3  ;;  %v1232_v23 = vmul.f32 0.5, %v2343_v3  ;;  %v2604_v6 = vld [vmem:[#allocation10 + $0x44] ss:$8 sps:$4 sm:$0xff]  }
 0x382   :  { %v1235_v8 = vmul.f32 %v2342_v1, %v1233_v5  ;;  %v2599_v5 = vld [vmem:[#allocation10 + $0x30] ss:$8 sps:$4 sm:$0xff]  }
 0x383   :  { %v1236_v9 = vmul.f32 %v2343_v3, %v1234_v7  ;;  %v2602_v7 = vld [vmem:[#allocation10 + $0x40] ss:$8 sps:$4 sm:$0xff]  }
 0x384   :  { %v1237_v12 = vmul.f32 0.044715, %v1235_v8  ;;  %v2607_v8 = vld [vmem:[#allocation10 + $0x54] ss:$8 sps:$4 sm:$0xff]  }
 0x385   :  { %v1238_v15 = vmul.f32 0.044715, %v1236_v9  ;;  %v2605_v9 = vld [vmem:[#allocation10 + $0x50] ss:$8 sps:$4 sm:$0xff]  }
 0x386   :  { %v1239_v16 = vadd.f32 %v2342_v1, %v1237_v12  ;;  %v2595_v1 = vld [vmem:[#allocation10 + $0x14] ss:$8 sps:$4 sm:$0xff]   ;;  %v2610_v12 = vld [vmem:[#allocation10 + $0x64] ss:$8 sps:$4 sm:$0xff]  }
 0x387   :  { %v1240_v17 = vadd.f32 %v2343_v3, %v1238_v15  ;;  %v2596_v3 = vld [vmem:[#allocation10 + $0x20] ss:$8 sps:$4 sm:$0xff]   ;;  %v2613_v15 = vld [vmem:[#allocation10 + $0x74] ss:$8 sps:$4 sm:$0xff]  }
 0x388   :  { %v1241_v10 = vmul.f32 0.7978846, %v1239_v16  ;;  %v2611_v16 = vld [vmem:[#allocation10 + $0x70] ss:$8 sps:$4 sm:$0xff]  }
 0x389   :  { %v1242_v18 = vmul.f32 0.7978846, %v1240_v17  ;;  %v2614_v17 = vld [vmem:[#allocation12] ss:$8 sps:$4 sm:$0xff]  }
 0x38a   :  { %2674 = vtanh.f32 %v1241_v10  ;;  %v2616_v10 = vld [vmem:[#allocation12 + $0x4] ss:$8 sps:$4 sm:$0xff]  }
 0x38b   :  { %2676 = vtanh.f32 %v1242_v18  ;;  %v2619_v18 = vld [vmem:[#allocation12 + $0x14] ss:$8 sps:$4 sm:$0xff]   ;;  %1995 = vmatprep.subr.bf16.mxu1 %v2616_v10 }
 0x38c   :  { %1996 = vmatpush1.bf16.msra.mxu1 %v2614_v17 }
 0x38d   :  { %1997 = vmatprep.subr.bf16.mxu1 %v2619_v18 }
 0x394   :  { %v2675_v19 = vpop.eup %2674 }
 0x395   :  { %v2677_v14 = vpop.eup %2676  ;;  %v1245_v22 = vadd.f32 1.0, %v2675_v19  ;;  %v2617_v19 = vld [vmem:[#allocation12 + $0x10] ss:$8 sps:$4 sm:$0xff]  }
 0x396   :  { %v1246_v20 = vadd.f32 1.0, %v2677_v14  ;;  %v2622_v14 = vld [vmem:[#allocation12 + $0x24] ss:$8 sps:$4 sm:$0xff]   ;;  %1998 = vmatpush1.bf16.msra.mxu1 %v2617_v19 }
 0x397   :  { %v1247_v24 = vmul.f32 %v1245_v22, %v1231_v21  ;;  %v2620_v21 = vld [vmem:[#allocation12 + $0x20] ss:$8 sps:$4 sm:$0xff]   ;;  %1999 = vmatprep.subr.bf16.mxu1 %v2622_v14  ;;  %v2625_v22 = vld [vmem:[#allocation12 + $0x34] ss:$8 sps:$4 sm:$0xff]  }
 0x398   :  { %v1248_v25 = vmul.f32 %v1246_v20, %v1232_v23  ;;  %v2623_v23 = vld [vmem:[#allocation12 + $0x30] ss:$8 sps:$4 sm:$0xff]   ;;  %v2628_v20 = vld [vmem:[#allocation12 + $0x44] ss:$8 sps:$4 sm:$0xff]  }
 0x399   :  { %v1249_v28 = vpack.c.bf16 %v1247_v24, %v1247_v24  ;;  %v2626_v24 = vld [vmem:[#allocation12 + $0x40] ss:$8 sps:$4 sm:$0xff]  }
 0x39a   :  { %v1250_v26 = vpack.c.bf16 %v1248_v25, %v1248_v25  ;;  %2000 = vmatpush1.bf16.msra.mxu1 %v2620_v21  ;;  %v2631_v25 = vld [vmem:[#allocation12 + $0x54] ss:$8 sps:$4 sm:$0xff]  }
 0x39b   :  { %2001 = vmatprep.subr.bf16.mxu1 %v2625_v22 }
 0x39c   :  { %1412 = vmatprep.mubr.bf16.mxu0 %v1250_v26  ;;  %v2629_v26 = vld [vmem:[#allocation12 + $0x50] ss:$8 sps:$4 sm:$0xff]  }
 0x39d   :  { %1413 = vmatmul.mubr.bf16.vlgmr.msra.gmra.mrb[8].mxu0 %v1249_v28  ;;  %v2632_v28 = vld [vmem:[#allocation12 + $0x60] ss:$8 sps:$4 sm:$0xff]  }
 0x39e   :  { %2303 = vmatpush3.bf16.msra.mxu0 %v2574_v27  ;;  %2318 = vmatprep.mubr.msk.bf16.mxu0 %vm2855_vm2, %v2854_v59  ;;  %v2634_v27 = vld [vmem:[#allocation12 + $0x64] ss:$8 sps:$4 sm:$0xff]  }
 0x39f   :  { %2304 = vmatprep.subr.bf16.mxu0 %v2854_v59  ;;  %2002 = vmatpush1.bf16.msra.mxu1 %v2623_v23 }
 0x3a0   :  { %2003 = vmatprep.subr.bf16.mxu1 %v2628_v20 }
 0x3a2   :  { %2305 = vmatpush3.bf16.msra.mxu0 %v2575_v29  ;;  %v2637_v29 = vld [vmem:[#allocation12 + $0x74] ss:$8 sps:$4 sm:$0xff]  }
 0x3a3   :  { %2306 = vmatprep.subr.bf16.mxu0 %v2854_v59  ;;  %2004 = vmatpush1.bf16.msra.mxu1 %v2626_v24 }
 0x3a4   :  { %2005 = vmatprep.subr.bf16.mxu1 %v2631_v25 }
 0x3a6   :  { %2307 = vmatpush3.bf16.msra.mxu0 %v2576_v30  ;;  %v2635_v30 = vld [vmem:[#allocation12 + $0x70] ss:$8 sps:$4 sm:$0xff]  }
 0x3a7   :  { %2308 = vmatprep.subr.bf16.mxu0 %v2854_v59  ;;  %2006 = vmatpush1.bf16.msra.mxu1 %v2629_v26 }
 0x3a8   :  { %2007 = vmatprep.subr.bf16.mxu1 %v2634_v27 }
 0x3aa   :  { %2309 = vmatpush3.bf16.msra.mxu0 %v2577_v31  ;;  %v2640_v31 = vld [vmem:[#allocation12 + $0x84] ss:$8 sps:$4 sm:$0xff]  }
 0x3ab   :  { %2310 = vmatprep.subr.bf16.mxu0 %v2854_v59  ;;  %2008 = vmatpush1.bf16.msra.mxu1 %v2632_v28 }
 0x3ac   :  { %2009 = vmatprep.subr.bf16.mxu1 %v2637_v29 }
 0x3ae   :  { %2311 = vmatpush3.bf16.msra.mxu0 %v2578_v32  ;;  %v2638_v32 = vld [vmem:[#allocation12 + $0x80] ss:$8 sps:$4 sm:$0xff]  }
 0x3af   :  { %2312 = vmatprep.subr.bf16.mxu0 %v2854_v59  ;;  %2010 = vmatpush1.bf16.msra.mxu1 %v2635_v30 }
 0x3b0   :  { %2011 = vmatprep.subr.bf16.mxu1 %v2640_v31 }
 0x3b2   :  { %2313 = vmatpush3.bf16.msra.mxu0 %v2579_v33  ;;  %v2643_v33 = vld [vmem:[#allocation12 + $0x94] ss:$8 sps:$4 sm:$0xff]  }
 0x3b3   :  { %2314 = vmatprep.subr.bf16.mxu0 %v2854_v59  ;;  %2012 = vmatpush1.bf16.msra.mxu1 %v2638_v32 }
 0x3b4   :  { %2013 = vmatprep.subr.bf16.mxu1 %v2643_v33 }
 0x3b6   :  { %2315 = vmatpush3.bf16.msra.mxu0 %v2580_v34  ;;  %v2641_v34 = vld [vmem:[#allocation12 + $0x90] ss:$8 sps:$4 sm:$0xff]  }
 0x3b7   :  { %2316 = vmatprep.subr.bf16.mxu0 %v2854_v59  ;;  %2014 = vmatpush1.bf16.msra.mxu1 %v2641_v34 }
 0x3ba   :  { %2317 = vmatpush3.bf16.msra.mxu0 %v2581_v35  ;;  %v2646_v35 = vld [vmem:[#allocation12 + $0xa4] ss:$8 sps:$4 sm:$0xff]  }
 0x3bb   :  { %2322 = vmatprep.subr.bf16.mxu0 %v2854_v59  ;;  %2015 = vmatprep.subr.bf16.mxu1 %v2646_v35 }
 0x470   :  { %v2278_v36 = vpop.f32.mrb[8].mxu0 }
 0x471   :  { %v2279_v38 = vpop.f32.mrb[9].mxu0 }
 0x472   :  { %v2280_v39 = vadd.f32 %v2279_v38, %v2278_v36  ;;  %v2281_v40 = vpop.f32.mrb[10].mxu0  ;;  %v2644_v36 = vld [vmem:[#allocation12 + $0xa0] ss:$8 sps:$4 sm:$0xff]   ;;  %v2647_v38 = vld [vmem:[#allocation12 + $0xb0] ss:$8 sps:$4 sm:$0xff]  }
 0x473   :  { %v2282_v41 = vpop.f32.mrb[11].mxu0  ;;  %2016 = vmatpush1.bf16.msra.mxu1 %v2644_v36  ;;  %v2650_v40 = vld [vmem:[#allocation12 + $0xc0] ss:$8 sps:$4 sm:$0xff]  }
 0x474   :  { %v1415_v42 = vadd.f32 %v2280_v39, %v1283_v37  ;;  %v2649_v37 = vld [vmem:[#allocation12 + $0xb4] ss:$8 sps:$4 sm:$0xff]   ;;  %v2652_v39 = vld [vmem:[#allocation12 + $0xc4] ss:$8 sps:$4 sm:$0xff]  }
 0x475   :  { %2017 = vmatprep.subr.bf16.mxu1 %v2649_v37  ;;  %v2655_v41 = vld [vmem:[#allocation12 + $0xd4] ss:$8 sps:$4 sm:$0xff]  }
 0x476   :  { %v1420_v43 = vmax.f32 %v1415_v42, 0.0  ;;  %v2653_v42 = vld [vmem:[#allocation12 + $0xd0] ss:$8 sps:$4 sm:$0xff]  }
 0x477   :  { %2018 = vmatpush1.bf16.msra.mxu1 %v2647_v38 }
 0x478   :  { %v1421_v45 = vpack.c.bf16 %v1420_v43, %v1420_v43  ;;  %2019 = vmatprep.subr.bf16.mxu1 %v2652_v39  ;;  %v1545_v43 = vld [vmem:[%s3114_s9 + $0x5] ss:$0 sm:$0xff] }
 0x47a   :  { %2319 = vmatmul.mubr.bf16.vlgmr.msra.gmra.mrb[12].mxu0 %v1421_v45 }
 0x47b   :  { %2323 = vmatpush3.bf16.msra.mxu0 %v2582_v44  ;;  %2338 = vmatprep.mubr.msk.bf16.mxu0 %vm2855_vm2, %v2854_v59 }
 0x47c   :  { %2324 = vmatprep.subr.bf16.mxu0 %v2854_v59  ;;  %2020 = vmatpush1.bf16.msra.mxu1 %v2650_v40 }
 0x47d   :  { %2021 = vmatprep.subr.bf16.mxu1 %v2655_v41 }
 0x47f   :  { %2325 = vmatpush3.bf16.msra.mxu0 %v2583_v46 }
 0x480   :  { %2326 = vmatprep.subr.bf16.mxu0 %v2854_v59  ;;  %2022 = vmatpush1.bf16.msra.mxu1 %v2653_v42 }
 0x483   :  { %2327 = vmatpush3.bf16.msra.mxu0 %v2584_v47 }
 0x484   :  { %2328 = vmatprep.subr.bf16.mxu0 %v2854_v59 }
 0x487   :  { %2329 = vmatpush3.bf16.msra.mxu0 %v2585_v48 }
 0x488   :  { %2330 = vmatprep.subr.bf16.mxu0 %v2854_v59 }
 0x48b   :  { %2331 = vmatpush3.bf16.msra.mxu0 %v2586_v49 }
 0x48c   :  { %2332 = vmatprep.subr.bf16.mxu0 %v2854_v59 }
 0x48f   :  { %2333 = vmatpush3.bf16.msra.mxu0 %v2587_v50 }
 0x490   :  { %2334 = vmatprep.subr.bf16.mxu0 %v2854_v59 }
 0x493   :  { %2335 = vmatpush3.bf16.msra.mxu0 %v2588_v51  ;;  %v2658_v51 = vld [vmem:[#allocation12 + $0xe4] ss:$8 sps:$4 sm:$0xff]  }
 0x494   :  { %2336 = vmatprep.subr.bf16.mxu0 %v2854_v59  ;;  %v2593_v59 = vld [vmem:[#allocation10 + $0x10] ss:$8 sps:$4 sm:$0xff]   ;;  %2023 = vmatprep.subr.bf16.mxu1 %v2658_v51 }
 0x497   :  { %2337 = vmatpush3.bf16.msra.mxu0 %v2589_v52  ;;  %v2656_v52 = vld [vmem:[#allocation12 + $0xe0] ss:$8 sps:$4 sm:$0xff]  }
 0x498   :  { %1745 = vmatprep.subr.bf16.mxu0 %v2592_v53  ;;  %2024 = vmatpush1.bf16.msra.mxu1 %v2656_v52  ;;  %v2661_v53 = vld [vmem:[#allocation12 + $0xf4] ss:$8 sps:$4 sm:$0xff]  }
 0x499   :  { %2025 = vmatprep.subr.bf16.mxu1 %v2661_v53 }
 0x54d   :  { %v1521_v55 = vpop.f32.mrb[12].mxu0 }
 0x54e   :  { %v1522_v56 = vadd.f32 %v1521_v55, %v1438_v54  ;;  %v2320_v57 = vpop.f32.mrb[13].mxu0  ;;  %v2659_v54 = vld [vmem:[#allocation12 + $0xf0] ss:$8 sps:$4 sm:$0xff]   ;;  %v2212_v55 = vld [vmem:[%s3114_s9 + $0x6] ss:$8 sm:$0x3] }
 0x54f   :  { %v1524_v58 = vpop.f32.mrb[14].mxu0  ;;  %2026 = vmatpush1.bf16.msra.mxu1 %v2659_v54  ;;  %v1662_v57 = vrot.slane %v2212_v55, %v3036_v13 }
 0x550   :  { %v1527_v60 = vmax.f32 %v1522_v56, 0.0  ;;  %v2321_v61 = vpop.f32.mrb[15].mxu0  ;;  %v1658_v56 = vrot.slane %v2212_v55, %v3030_v11 }
 0x552   :  { %v1528_v63 = vpack.c.bf16 %v1527_v60, %v1527_v60 }
 0x554   :  { %2339 = vmatmul.mubr.bf16.vlgmr.msra.gmra.mrb[16].mxu0 %v1528_v63 }
 0x555   :  { %1746 = vmatpush1.bf16.msra.mxu0 %v2590_v62  ;;  %1777 = vmatprep.mubr.bf16.mxu0 %v2853_v0  ;;  %v2608_v0 = vld [vmem:[#allocation10 + $0x60] ss:$8 sps:$4 sm:$0xff]  }
 0x556   :  { %1747 = vmatprep.subr.bf16.mxu0 %v2595_v1 }
 0x559   :  { %1748 = vmatpush1.bf16.msra.mxu0 %v2593_v59 }
 0x55a   :  { %1749 = vmatprep.subr.bf16.mxu0 %v2598_v2 }
 0x55d   :  { %1750 = vmatpush1.bf16.msra.mxu0 %v2596_v3 }
 0x55e   :  { %1751 = vmatprep.subr.bf16.mxu0 %v2601_v4 }
 0x561   :  { %1752 = vmatpush1.bf16.msra.mxu0 %v2599_v5  ;;  %v2229_v5 = vld [vmem:[%s3114_s9 + $0x7] ss:$8 sm:$0x3] }
 0x562   :  { %1753 = vmatprep.subr.bf16.mxu0 %v2604_v6  ;;  %v1828_v6 = vrot.slane %v2229_v5, %v3030_v11 }
 0x565   :  { %1754 = vmatpush1.bf16.msra.mxu0 %v2602_v7  ;;  %v1832_v7 = vrot.slane %v2229_v5, %v3036_v13 }
 0x566   :  { %1755 = vmatprep.subr.bf16.mxu0 %v2607_v8 }
 0x569   :  { %1756 = vmatpush1.bf16.msra.mxu0 %v2605_v9 }
 0x56a   :  { %1757 = vmatprep.subr.bf16.mxu0 %v2610_v12 }
 0x56d   :  { %1758 = vmatpush1.bf16.msra.mxu0 %v2608_v0 }
 0x56e   :  { %1759 = vmatprep.subr.bf16.mxu0 %v2613_v15 }
 0x571   :  { %1760 = vmatpush1.bf16.msra.mxu0 %v2611_v16 }
 0x627   :  { %v1628_v44 = vpop.f32.mrb[16].mxu0 }
 0x628   :  { %v1629_v45 = vadd.f32 %v1628_v44, %v1545_v43  ;;  %v2340_v46 = vpop.f32.mrb[17].mxu0 }
 0x629   :  { %v1631_v47 = vpop.f32.mrb[18].mxu0 }
 0x62a   :  { %v1634_v48 = vmax.f32 %v1629_v45, 0.0  ;;  %v2341_v49 = vpop.f32.mrb[19].mxu0 }
 0x62c   :  { %v1635_v50 = vpack.c.bf16 %v1634_v48, %v1634_v48 }
 0x62e   :  { %1778 = vmatmul.mubr.bf16.vlgmr.msra.gmra.mrb[20].mxu0 %v1635_v50 }
 0x701   :  { %v1779_v58 = vpop.f32.mrb[20].mxu0 }
 0x702   :  { %v1780_v60 = vadd.f32 %v1779_v58, %v1658_v56  ;;  %v1781_v61 = vpop.f32.mrb[21].mxu0 }
 0x703   :  { %v1782_v62 = vadd.f32 %v1781_v61, %v1662_v57  ;;  %v1783_v63 = vpop.f32.mrb[22].mxu0 }
 0x704   :  { %v1786_v1 = vmax.f32 %v1780_v60, 0.0  ;;  %v1784_v59 = vpop.f32.mrb[23].mxu0 }
 0x705   :  { %v1787_v2 = vmax.f32 %v1782_v62, 0.0 }
 0x706   :  { %v1788_v4 = vpack.c.bf16 %v1786_v1, %v1786_v1 }
 0x707   :  { %v1789_v3 = vpack.c.bf16 %v1787_v2, %v1787_v2 }
 0x709   :  { %2027 = vmatprep.mubr.bf16.mxu1 %v1789_v3 }
 0x70a   :  { %2028 = vmatmul.mubr.bf16.vlgmr.msra.gmra.mrb[8].mxu1 %v1788_v4 }
 0x7dd   :  { %v2029_v8 = vpop.f32.mrb[8].mxu1 }
 0x7de   :  { %v2030_v9 = vadd.f32 %v2029_v8, %v1828_v6  ;;  %v2031_v12 = vpop.f32.mrb[9].mxu1 }
 0x7df   :  { %v2032_v0 = vadd.f32 %v2031_v12, %v1832_v7  ;;  %v2033_v15 = vpop.f32.mrb[10].mxu1 }
 0x7e0   :  { %2036 = vst [vmem:[%s3115_s10] sm:$0xff] %v2030_v9  ;;  %v2034_v16 = vpop.f32.mrb[11].mxu1 }
 0x7e1   :  { %2037 = vst [vmem:[%s3115_s10 + $0x8] sm:$0xff] %v2032_v0 }
 0x7e2   :  { %2042 = vsyncpa [#allocation3], 1 }
 0x7e3   :  { %2043 = vsyncpa [#allocation5], 1 }
 0x7e4   :  { %2044 = vsyncpa [#allocation8], 1 }
 0x7e5   :  { %2045 = vsyncpa [#allocation11], 1 }

</bundles_post_ra>
